<compile_context>
chip_gen: v6e
topology: v6e:2x2x1
jax: 0.10.0
libtpu: 0.0.40
codegen_flags: <defaults>
</compile_context>

<pallas_src>
import functools
import math

import jax
import jax.numpy as jnp
from jax import lax
from jax.experimental import pallas as pl
from jax.experimental.pallas import tpu as pltpu


def _mha_kernel(h_ref, mask_ref, wqkv_ref, bqkv_ref, wo_ref, bo_ref,
                gamma_ref, beta_ref, out_ref, *, num_heads, eps):
    # h_ref:    [1, L, H]        one batch element per grid step
    # mask_ref: [1, 1, L]        additive attention mask row (f32)
    # wqkv_ref: [H, 3H]  bf16    fused [Wq * 1/sqrt(hd) | Wk | Wv]
    # bqkv_ref: [1, 3H]  f32     fused [bq * 1/sqrt(hd) | bk | bv]
    # wo_ref:   [nh, hd, H] bf16 output projection grouped by head
    # bo_ref / gamma_ref / beta_ref: [1, H] f32
    # out_ref:  [1, L, H]
    h = h_ref[0]                                   # [L, H]
    L, H = h.shape
    hd = H // num_heads

    # Fused QKV projection: one bf16 MXU pass over all L rows, f32 accumulation.
    qkv = jnp.dot(h.astype(jnp.bfloat16), wqkv_ref[...],
                  preferred_element_type=jnp.float32) + bqkv_ref[...]

    # Hoisted mask broadcast: emitted once per grid step, not once per head.
    mask_b = jnp.broadcast_to(mask_ref[0], (L, L))

    out = jnp.zeros((L, H), jnp.float32)
    # Static unroll over heads (num_heads is small).  Each head's context is
    # folded directly into the output-projection accumulator, so there is no
    # merged-context concat and per-head temporaries die within the iteration.
    for n in range(num_heads):
        qh = qkv[:, n * hd:(n + 1) * hd].astype(jnp.bfloat16)
        kh = qkv[:, H + n * hd:H + (n + 1) * hd].astype(jnp.bfloat16)
        vh = qkv[:, 2 * H + n * hd:2 * H + (n + 1) * hd].astype(jnp.bfloat16)

        # Scores: Q already carries 1/sqrt(hd); contraction over head_dim (no k^T
        # materialized).  Mask added in f32.
        s = lax.dot_general(qh, kh, (((1,), (1,)), ((), ())),
                            preferred_element_type=jnp.float32) + mask_b

        # f32 softmax statistics; normalization deferred past the PV matmul:
        # one [L, hd] multiply + EUP reciprocal instead of an [L, L] divide.
        m = jnp.max(s, axis=-1, keepdims=True)
        e = jnp.exp(s - m)                                       # dropout: eval no-op
        denom = jnp.sum(e, axis=-1, keepdims=True)
        ctx = jnp.dot(e.astype(jnp.bfloat16), vh,
                      preferred_element_type=jnp.float32)        # [L, hd], unnormalized
        ctx = (ctx * pl.reciprocal(denom, approx=True)).astype(jnp.bfloat16)

        # Per-head slice of the output projection: wo_ref[n] is a free
        # leading-dim ref offset (no lane-axis slicing of the weight).
        out = out + jnp.dot(ctx, wo_ref[n], preferred_element_type=jnp.float32)

    # Output bias + residual + LayerNorm epilogue, all in f32 / VMEM.
    x = out + bo_ref[...] + h.astype(jnp.float32)
    mu = jnp.mean(x, axis=-1, keepdims=True)
    var = jnp.mean(jnp.square(x - mu), axis=-1, keepdims=True)
    y = (x - mu) * lax.rsqrt(var + eps)
    out_ref[0] = (y * gamma_ref[...] + beta_ref[...]).astype(out_ref.dtype)


def prepare_params(params, num_heads):
    """One-time weight prep: transpose PyTorch [out, in] weights, fuse Q/K/V,
    fold the 1/sqrt(head_dim) scale into Q, cast MXU operands to bf16 and
    pre-group the output projection by head."""
    H = params["q_w"].shape[0]
    hd = H // num_heads
    inv_scale = 1.0 / math.sqrt(hd)
    wqkv = jnp.concatenate([params["q_w"].T * inv_scale,
                            params["k_w"].T,
                            params["v_w"].T], axis=1)                     # [H, 3H]
    bqkv = jnp.concatenate([params["q_b"] * inv_scale,
                            params["k_b"], params["v_b"]])[None, :]       # [1, 3H]
    return {
        "wqkv": wqkv.astype(jnp.bfloat16),
        "bqkv": bqkv.astype(jnp.float32),
        "wo": params["out_w"].T.reshape(num_heads, hd, H).astype(jnp.bfloat16),
        "bo": params["out_b"][None, :].astype(jnp.float32),
        "gamma": params["ln_w"][None, :].astype(jnp.float32),
        "beta": params["ln_b"][None, :].astype(jnp.float32),
    }


def sketch_multihead_attention(hidden_states, attention_mask, prep, *, num_heads,
                               single_buffer_weights=True):
    """hidden_states: [B, L, H]; attention_mask: [B, 1, 1, L] additive mask."""
    B, L, H = hidden_states.shape
    hd = H // num_heads
    mask3d = attention_mask.reshape(B, 1, L)       # cheap glue; jitted with the call

    def const_spec(shape):
        # Weights / biases / LN params never change across the grid (constant
        # index_map -> fetched once).  Where supported, single-buffer them so
        # they don't pay 2x VMEM for pipelining they don't need (v7x: 64 MiB/TC).
        index_map = lambda b: (0,) * len(shape)
        if single_buffer_weights and hasattr(pl, "Buffered"):
            return pl.BlockSpec(shape, index_map, pipeline_mode=pl.Buffered(1))
        return pl.BlockSpec(shape, index_map)

    kernel = functools.partial(_mha_kernel, num_heads=num_heads, eps=1e-5)

    grid_spec = pltpu.PrefetchScalarGridSpec(
        num_scalar_prefetch=0,
        grid=(B,),
        in_specs=[
            pl.BlockSpec((1, L, H), lambda b: (b, 0, 0)),    # hidden states block
            pl.BlockSpec((1, 1, L), lambda b: (b, 0, 0)),    # additive mask row
            const_spec((H, 3 * H)),                          # fused QKV weight (bf16)
            const_spec((1, 3 * H)),                          # fused QKV bias   (f32)
            const_spec((num_heads, hd, H)),                  # per-head out-proj weight (bf16)
            const_spec((1, H)),                              # out-proj bias
            const_spec((1, H)),                              # LayerNorm gamma
            const_spec((1, H)),                              # LayerNorm beta
        ],
        out_specs=pl.BlockSpec((1, L, H), lambda b: (b, 0, 0)),
    )

    return pl.pallas_call(
        kernel,
        out_shape=jax.ShapeDtypeStruct((B, L, H), hidden_states.dtype),
        grid_spec=grid_spec,
        compiler_params=pltpu.CompilerParams(
            dimension_semantics=("parallel",),
            vmem_limit_bytes=64 * 1024 * 1024),
    )(hidden_states, mask3d, prep["wqkv"], prep["bqkv"], prep["wo"],
      prep["bo"], prep["gamma"], prep["beta"])


def _init_linear(key, out_dim, in_dim):
    kw, kb = jax.random.split(key)
    bound = 1.0 / math.sqrt(in_dim)
    w = jax.random.uniform(kw, (out_dim, in_dim), jnp.float32, -bound, bound)
    b = jax.random.uniform(kb, (out_dim,), jnp.float32, -bound, bound)
    return w, b


def _reference(h, mask, params, num_heads, mxu_dtype=jnp.float32):
    """Pure-JAX reference matching the PyTorch forward (eval mode).

    mxu_dtype=bfloat16 emulates the kernel's matmul-operand precision while
    keeping f32 accumulation and f32 softmax / LayerNorm statistics."""
    B, L, H = h.shape
    hd = H // num_heads
    c = lambda x: x.astype(mxu_dtype)

    def linear(x, w, b):
        return jnp.dot(c(x), c(w.T), preferred_element_type=jnp.float32) + b

    q = linear(h, params["q_w"], params["q_b"])
    k = linear(h, params["k_w"], params["k_b"])
    v = linear(h, params["v_w"], params["v_b"])

    def split(x):
        return x.reshape(B, L, num_heads, hd).transpose(0, 2, 1, 3)

    qh, kh, vh = split(q), split(k), split(v)
    s = jnp.einsum("bnqd,bnkd->bnqk", c(qh), c(kh),
                   preferred_element_type=jnp.float32) / math.sqrt(hd) + mask
    p = jax.nn.softmax(s, axis=-1)
    ctx = jnp.einsum("bnqk,bnkd->bnqd", c(p), c(vh),
                     preferred_element_type=jnp.float32)
    ctx = ctx.transpose(0, 2, 1, 3).reshape(B, L, H)
    out = jnp.dot(c(ctx), c(params["out_w"].T),
                  preferred_element_type=jnp.float32) + params["out_b"]
    x = out + h
    mu = x.mean(-1, keepdims=True)
    var = ((x - mu) ** 2).mean(-1, keepdims=True)
    return (x - mu) / jnp.sqrt(var + 1e-5) * params["ln_w"] + params["ln_b"]


if __name__ == "__main__":
    B, L, H, num_heads = 2, 8, 32, 4

    key = jax.random.PRNGKey(0)
    k_h, k_q, k_k, k_v, k_o, k_g, k_b = jax.random.split(key, 7)

    hidden_states = jax.random.normal(k_h, (B, L, H), jnp.float32)

    q_w, q_b = _init_linear(k_q, H, H)
    k_w, k_b_ = _init_linear(k_k, H, H)
    v_w, v_b = _init_linear(k_v, H, H)
    out_w, out_b = _init_linear(k_o, H, H)
    ln_w = 1.0 + 0.1 * jax.random.normal(k_g, (H,), jnp.float32)
    ln_b = 0.1 * jax.random.normal(k_b, (H,), jnp.float32)

    params = {
        "q_w": q_w, "q_b": q_b,
        "k_w": k_w, "k_b": k_b_,
        "v_w": v_w, "v_b": v_b,
        "out_w": out_w, "out_b": out_b,
        "ln_w": ln_w, "ln_b": ln_b,
    }

    # Additive attention mask, [B, 1, 1, L] convention: batch 0 sees all 8
    # tokens, batch 1 sees only the first 6.
    valid_lens = jnp.array([8, 6])
    valid = (jnp.arange(L)[None, :] < valid_lens[:, None]).astype(jnp.float32)
    attention_mask = ((1.0 - valid) * -1e9).reshape(B, 1, 1, L)

    prep = prepare_params(params, num_heads)    # one-time weight fusion / bf16 cast

    mha = jax.jit(functools.partial(sketch_multihead_attention, num_heads=num_heads))
    try:
        out = jax.block_until_ready(mha(hidden_states, attention_mask, prep))
    except Exception:
        # pipeline_mode=pl.Buffered(1) not supported on this jax build: fall back
        # to default double-buffered weight BlockSpecs (identical math).
        mha = jax.jit(functools.partial(sketch_multihead_attention,
                                        num_heads=num_heads,
                                        single_buffer_weights=False))
        out = jax.block_until_ready(mha(hidden_states, attention_mask, prep))

    assert out.shape == (B, L, H)

    # Tight check vs. a reference that mirrors the kernel's bf16 MXU operands,
    # plus a looser check vs. the exact-f32 PyTorch-equivalent forward.
    ref_bf16 = _reference(hidden_states, attention_mask, params, num_heads,
                          mxu_dtype=jnp.bfloat16)
    ref_f32 = _reference(hidden_states, attention_mask, params, num_heads)
    err_bf16 = float(jnp.max(jnp.abs(out - ref_bf16)))
    err_f32 = float(jnp.max(jnp.abs(out - ref_f32)))
    assert jnp.allclose(out, ref_bf16, atol=3e-2, rtol=3e-2), \
        f"max abs err vs bf16-matched ref = {err_bf16}"
    assert jnp.allclose(out, ref_f32, atol=1e-1, rtol=1e-1), \
        f"max abs err vs f32 ref = {err_f32}"

    print("KERNEL_OK")
</pallas_src>

<mosaic_0001>
module attributes {stable_mosaic.version = 11 : i64} {
  func.func @_mha_kernel(%arg0: i32, %arg1: memref<1x8x32xf32, #tpu.memory_space<vmem>>, %arg2: memref<1x1x8xf32, #tpu.memory_space<vmem>>, %arg3: memref<32x96xbf16, #tpu.memory_space<vmem>>, %arg4: memref<1x96xf32, #tpu.memory_space<vmem>>, %arg5: memref<4x8x32xbf16, #tpu.memory_space<vmem>>, %arg6: memref<1x32xf32, #tpu.memory_space<vmem>>, %arg7: memref<1x32xf32, #tpu.memory_space<vmem>>, %arg8: memref<1x32xf32, #tpu.memory_space<vmem>>, %arg9: memref<1x8x32xf32, #tpu.memory_space<vmem>>) attributes {dimension_semantics = [#tpu.dimension_semantics<parallel>], iteration_bounds = array<i64: 2>, scalar_prefetch = 0 : i64, scratch_operands = 0 : i64, tpu.core_type = #tpu.core_type<tc>, window_params = [{transform_indices = @transform_0, window_bounds = array<i64: 1, 8, 32>}, {transform_indices = @transform_1, window_bounds = array<i64: 1, 1, 8>}, {pipeline_mode = #tpu.pipeline_mode<synchronous>, transform_indices = @transform_2, window_bounds = array<i64: 32, 96>}, {pipeline_mode = #tpu.pipeline_mode<synchronous>, transform_indices = @transform_3, window_bounds = array<i64: 1, 96>}, {pipeline_mode = #tpu.pipeline_mode<synchronous>, transform_indices = @transform_4, window_bounds = array<i64: 4, 8, 32>}, {pipeline_mode = #tpu.pipeline_mode<synchronous>, transform_indices = @transform_5, window_bounds = array<i64: 1, 32>}, {pipeline_mode = #tpu.pipeline_mode<synchronous>, transform_indices = @transform_6, window_bounds = array<i64: 1, 32>}, {pipeline_mode = #tpu.pipeline_mode<synchronous>, transform_indices = @transform_7, window_bounds = array<i64: 1, 32>}, {transform_indices = @transform_8, window_bounds = array<i64: 1, 8, 32>}]} {
    %c0 = arith.constant 0 : index
    %c0_0 = arith.constant 0 : index
    %c0_1 = arith.constant 0 : index
    %0 = vector.load %arg1[%c0, %c0_0, %c0_1] : memref<1x8x32xf32, #tpu.memory_space<vmem>>, vector<1x8x32xf32>
    %1 = vector.shape_cast %0 : vector<1x8x32xf32> to vector<8x32xf32>
    %2 = arith.truncf %1 : vector<8x32xf32> to vector<8x32xbf16>
    %c0_2 = arith.constant 0 : index
    %c0_3 = arith.constant 0 : index
    %3 = vector.load %arg3[%c0_2, %c0_3] : memref<32x96xbf16, #tpu.memory_space<vmem>>, vector<32x96xbf16>
    %cst = arith.constant dense<0.000000e+00> : vector<8x96xf32>
    %4 = tpu.matmul %2, %3, %cst {dimension_numbers = #tpu.dot_dimension_numbers<[1], [0], [0], [1], [0, 0, 1, 1], [], []>} : vector<8x32xbf16>, vector<32x96xbf16>, vector<8x96xf32> -> vector<8x96xf32>
    %c0_4 = arith.constant 0 : index
    %c0_5 = arith.constant 0 : index
    %5 = vector.load %arg4[%c0_4, %c0_5] : memref<1x96xf32, #tpu.memory_space<vmem>>, vector<1x96xf32>
    %6 = vector.broadcast %5 : vector<1x96xf32> to vector<8x96xf32>
    %7 = arith.addf %4, %6 : vector<8x96xf32>
    %c0_6 = arith.constant 0 : index
    %c0_7 = arith.constant 0 : index
    %c0_8 = arith.constant 0 : index
    %8 = vector.load %arg2[%c0_6, %c0_7, %c0_8] : memref<1x1x8xf32, #tpu.memory_space<vmem>>, vector<1x1x8xf32>
    %9 = vector.shape_cast %8 : vector<1x1x8xf32> to vector<1x8xf32>
    %10 = vector.shape_cast %9 : vector<1x8xf32> to vector<1x8xf32>
    %11 = vector.broadcast %10 : vector<1x8xf32> to vector<8x8xf32>
    %cst_9 = arith.constant 0.000000e+00 : f32
    %12 = vector.broadcast %cst_9 : f32 to vector<8x32xf32>
    %13 = vector.extract_strided_slice %7 {offsets = [0, 0], sizes = [8, 8], strides = [1, 1]} : vector<8x96xf32> to vector<8x8xf32>
    %14 = arith.truncf %13 : vector<8x8xf32> to vector<8x8xbf16>
    %15 = vector.extract_strided_slice %7 {offsets = [0, 32], sizes = [8, 8], strides = [1, 1]} : vector<8x96xf32> to vector<8x8xf32>
    %16 = arith.truncf %15 : vector<8x8xf32> to vector<8x8xbf16>
    %17 = vector.extract_strided_slice %7 {offsets = [0, 64], sizes = [8, 8], strides = [1, 1]} : vector<8x96xf32> to vector<8x8xf32>
    %18 = arith.truncf %17 : vector<8x8xf32> to vector<8x8xbf16>
    %cst_10 = arith.constant dense<0.000000e+00> : vector<8x8xf32>
    %19 = tpu.matmul %14, %16, %cst_10 {dimension_numbers = #tpu.dot_dimension_numbers<[1], [1], [0], [0], [0, 0, 1, 0], [], []>} : vector<8x8xbf16>, vector<8x8xbf16>, vector<8x8xf32> -> vector<8x8xf32>
    %20 = arith.addf %19, %11 : vector<8x8xf32>
    %cst_11 = arith.constant dense<0xFF800000> : vector<8xf32>
    %21 = vector.multi_reduction <maximumf>, %20, %cst_11 [1] : vector<8x8xf32> to vector<8xf32>
    %22 = vector.shape_cast %21 : vector<8xf32> to vector<8x1xf32>
    %23 = vector.broadcast %22 : vector<8x1xf32> to vector<8x8xf32>
    %24 = arith.subf %20, %23 : vector<8x8xf32>
    %25 = math.exp %24 : vector<8x8xf32>
    %cst_12 = arith.constant dense<0.000000e+00> : vector<8xf32>
    %26 = vector.multi_reduction <add>, %25, %cst_12 [1] : vector<8x8xf32> to vector<8xf32>
    %27 = vector.shape_cast %26 : vector<8xf32> to vector<8x1xf32>
    %28 = arith.truncf %25 : vector<8x8xf32> to vector<8x8xbf16>
    %cst_13 = arith.constant dense<0.000000e+00> : vector<8x8xf32>
    %29 = tpu.matmul %28, %18, %cst_13 {dimension_numbers = #tpu.dot_dimension_numbers<[1], [0], [0], [1], [0, 0, 1, 1], [], []>} : vector<8x8xbf16>, vector<8x8xbf16>, vector<8x8xf32> -> vector<8x8xf32>
    %30 = tpu.reciprocal %27 {approx = true} : vector<8x1xf32> -> vector<8x1xf32>
    %31 = vector.broadcast %30 : vector<8x1xf32> to vector<8x8xf32>
    %32 = arith.mulf %29, %31 : vector<8x8xf32>
    %33 = arith.truncf %32 : vector<8x8xf32> to vector<8x8xbf16>
    %c0_14 = arith.constant 0 : index
    %c0_15 = arith.constant 0 : index
    %c0_16 = arith.constant 0 : index
    %34 = vector.load %arg5[%c0_14, %c0_15, %c0_16] : memref<4x8x32xbf16, #tpu.memory_space<vmem>>, vector<1x8x32xbf16>
    %35 = vector.shape_cast %34 : vector<1x8x32xbf16> to vector<8x32xbf16>
    %cst_17 = arith.constant dense<0.000000e+00> : vector<8x32xf32>
    %36 = tpu.matmul %33, %35, %cst_17 {dimension_numbers = #tpu.dot_dimension_numbers<[1], [0], [0], [1], [0, 0, 1, 1], [], []>} : vector<8x8xbf16>, vector<8x32xbf16>, vector<8x32xf32> -> vector<8x32xf32>
    %37 = arith.addf %12, %36 : vector<8x32xf32>
    %38 = vector.extract_strided_slice %7 {offsets = [0, 8], sizes = [8, 8], strides = [1, 1]} : vector<8x96xf32> to vector<8x8xf32>
    %39 = arith.truncf %38 : vector<8x8xf32> to vector<8x8xbf16>
    %40 = vector.extract_strided_slice %7 {offsets = [0, 40], sizes = [8, 8], strides = [1, 1]} : vector<8x96xf32> to vector<8x8xf32>
    %41 = arith.truncf %40 : vector<8x8xf32> to vector<8x8xbf16>
    %42 = vector.extract_strided_slice %7 {offsets = [0, 72], sizes = [8, 8], strides = [1, 1]} : vector<8x96xf32> to vector<8x8xf32>
    %43 = arith.truncf %42 : vector<8x8xf32> to vector<8x8xbf16>
    %cst_18 = arith.constant dense<0.000000e+00> : vector<8x8xf32>
    %44 = tpu.matmul %39, %41, %cst_18 {dimension_numbers = #tpu.dot_dimension_numbers<[1], [1], [0], [0], [0, 0, 1, 0], [], []>} : vector<8x8xbf16>, vector<8x8xbf16>, vector<8x8xf32> -> vector<8x8xf32>
    %45 = arith.addf %44, %11 : vector<8x8xf32>
    %cst_19 = arith.constant dense<0xFF800000> : vector<8xf32>
    %46 = vector.multi_reduction <maximumf>, %45, %cst_19 [1] : vector<8x8xf32> to vector<8xf32>
    %47 = vector.shape_cast %46 : vector<8xf32> to vector<8x1xf32>
    %48 = vector.broadcast %47 : vector<8x1xf32> to vector<8x8xf32>
    %49 = arith.subf %45, %48 : vector<8x8xf32>
    %50 = math.exp %49 : vector<8x8xf32>
    %cst_20 = arith.constant dense<0.000000e+00> : vector<8xf32>
    %51 = vector.multi_reduction <add>, %50, %cst_20 [1] : vector<8x8xf32> to vector<8xf32>
    %52 = vector.shape_cast %51 : vector<8xf32> to vector<8x1xf32>
    %53 = arith.truncf %50 : vector<8x8xf32> to vector<8x8xbf16>
    %cst_21 = arith.constant dense<0.000000e+00> : vector<8x8xf32>
    %54 = tpu.matmul %53, %43, %cst_21 {dimension_numbers = #tpu.dot_dimension_numbers<[1], [0], [0], [1], [0, 0, 1, 1], [], []>} : vector<8x8xbf16>, vector<8x8xbf16>, vector<8x8xf32> -> vector<8x8xf32>
    %55 = tpu.reciprocal %52 {approx = true} : vector<8x1xf32> -> vector<8x1xf32>
    %56 = vector.broadcast %55 : vector<8x1xf32> to vector<8x8xf32>
    %57 = arith.mulf %54, %56 : vector<8x8xf32>
    %58 = arith.truncf %57 : vector<8x8xf32> to vector<8x8xbf16>
    %c1 = arith.constant 1 : index
    %c0_22 = arith.constant 0 : index
    %c0_23 = arith.constant 0 : index
    %59 = vector.load %arg5[%c1, %c0_22, %c0_23] : memref<4x8x32xbf16, #tpu.memory_space<vmem>>, vector<1x8x32xbf16>
    %60 = vector.shape_cast %59 : vector<1x8x32xbf16> to vector<8x32xbf16>
    %cst_24 = arith.constant dense<0.000000e+00> : vector<8x32xf32>
    %61 = tpu.matmul %58, %60, %cst_24 {dimension_numbers = #tpu.dot_dimension_numbers<[1], [0], [0], [1], [0, 0, 1, 1], [], []>} : vector<8x8xbf16>, vector<8x32xbf16>, vector<8x32xf32> -> vector<8x32xf32>
    %62 = arith.addf %37, %61 : vector<8x32xf32>
    %63 = vector.extract_strided_slice %7 {offsets = [0, 16], sizes = [8, 8], strides = [1, 1]} : vector<8x96xf32> to vector<8x8xf32>
    %64 = arith.truncf %63 : vector<8x8xf32> to vector<8x8xbf16>
    %65 = vector.extract_strided_slice %7 {offsets = [0, 48], sizes = [8, 8], strides = [1, 1]} : vector<8x96xf32> to vector<8x8xf32>
    %66 = arith.truncf %65 : vector<8x8xf32> to vector<8x8xbf16>
    %67 = vector.extract_strided_slice %7 {offsets = [0, 80], sizes = [8, 8], strides = [1, 1]} : vector<8x96xf32> to vector<8x8xf32>
    %68 = arith.truncf %67 : vector<8x8xf32> to vector<8x8xbf16>
    %cst_25 = arith.constant dense<0.000000e+00> : vector<8x8xf32>
    %69 = tpu.matmul %64, %66, %cst_25 {dimension_numbers = #tpu.dot_dimension_numbers<[1], [1], [0], [0], [0, 0, 1, 0], [], []>} : vector<8x8xbf16>, vector<8x8xbf16>, vector<8x8xf32> -> vector<8x8xf32>
    %70 = arith.addf %69, %11 : vector<8x8xf32>
    %cst_26 = arith.constant dense<0xFF800000> : vector<8xf32>
    %71 = vector.multi_reduction <maximumf>, %70, %cst_26 [1] : vector<8x8xf32> to vector<8xf32>
    %72 = vector.shape_cast %71 : vector<8xf32> to vector<8x1xf32>
    %73 = vector.broadcast %72 : vector<8x1xf32> to vector<8x8xf32>
    %74 = arith.subf %70, %73 : vector<8x8xf32>
    %75 = math.exp %74 : vector<8x8xf32>
    %cst_27 = arith.constant dense<0.000000e+00> : vector<8xf32>
    %76 = vector.multi_reduction <add>, %75, %cst_27 [1] : vector<8x8xf32> to vector<8xf32>
    %77 = vector.shape_cast %76 : vector<8xf32> to vector<8x1xf32>
    %78 = arith.truncf %75 : vector<8x8xf32> to vector<8x8xbf16>
    %cst_28 = arith.constant dense<0.000000e+00> : vector<8x8xf32>
    %79 = tpu.matmul %78, %68, %cst_28 {dimension_numbers = #tpu.dot_dimension_numbers<[1], [0], [0], [1], [0, 0, 1, 1], [], []>} : vector<8x8xbf16>, vector<8x8xbf16>, vector<8x8xf32> -> vector<8x8xf32>
    %80 = tpu.reciprocal %77 {approx = true} : vector<8x1xf32> -> vector<8x1xf32>
    %81 = vector.broadcast %80 : vector<8x1xf32> to vector<8x8xf32>
    %82 = arith.mulf %79, %81 : vector<8x8xf32>
    %83 = arith.truncf %82 : vector<8x8xf32> to vector<8x8xbf16>
    %c2 = arith.constant 2 : index
    %c0_29 = arith.constant 0 : index
    %c0_30 = arith.constant 0 : index
    %84 = vector.load %arg5[%c2, %c0_29, %c0_30] : memref<4x8x32xbf16, #tpu.memory_space<vmem>>, vector<1x8x32xbf16>
    %85 = vector.shape_cast %84 : vector<1x8x32xbf16> to vector<8x32xbf16>
    %cst_31 = arith.constant dense<0.000000e+00> : vector<8x32xf32>
    %86 = tpu.matmul %83, %85, %cst_31 {dimension_numbers = #tpu.dot_dimension_numbers<[1], [0], [0], [1], [0, 0, 1, 1], [], []>} : vector<8x8xbf16>, vector<8x32xbf16>, vector<8x32xf32> -> vector<8x32xf32>
    %87 = arith.addf %62, %86 : vector<8x32xf32>
    %88 = vector.extract_strided_slice %7 {offsets = [0, 24], sizes = [8, 8], strides = [1, 1]} : vector<8x96xf32> to vector<8x8xf32>
    %89 = arith.truncf %88 : vector<8x8xf32> to vector<8x8xbf16>
    %90 = vector.extract_strided_slice %7 {offsets = [0, 56], sizes = [8, 8], strides = [1, 1]} : vector<8x96xf32> to vector<8x8xf32>
    %91 = arith.truncf %90 : vector<8x8xf32> to vector<8x8xbf16>
    %92 = vector.extract_strided_slice %7 {offsets = [0, 88], sizes = [8, 8], strides = [1, 1]} : vector<8x96xf32> to vector<8x8xf32>
    %93 = arith.truncf %92 : vector<8x8xf32> to vector<8x8xbf16>
    %cst_32 = arith.constant dense<0.000000e+00> : vector<8x8xf32>
    %94 = tpu.matmul %89, %91, %cst_32 {dimension_numbers = #tpu.dot_dimension_numbers<[1], [1], [0], [0], [0, 0, 1, 0], [], []>} : vector<8x8xbf16>, vector<8x8xbf16>, vector<8x8xf32> -> vector<8x8xf32>
    %95 = arith.addf %94, %11 : vector<8x8xf32>
    %cst_33 = arith.constant dense<0xFF800000> : vector<8xf32>
    %96 = vector.multi_reduction <maximumf>, %95, %cst_33 [1] : vector<8x8xf32> to vector<8xf32>
    %97 = vector.shape_cast %96 : vector<8xf32> to vector<8x1xf32>
    %98 = vector.broadcast %97 : vector<8x1xf32> to vector<8x8xf32>
    %99 = arith.subf %95, %98 : vector<8x8xf32>
    %100 = math.exp %99 : vector<8x8xf32>
    %cst_34 = arith.constant dense<0.000000e+00> : vector<8xf32>
    %101 = vector.multi_reduction <add>, %100, %cst_34 [1] : vector<8x8xf32> to vector<8xf32>
    %102 = vector.shape_cast %101 : vector<8xf32> to vector<8x1xf32>
    %103 = arith.truncf %100 : vector<8x8xf32> to vector<8x8xbf16>
    %cst_35 = arith.constant dense<0.000000e+00> : vector<8x8xf32>
    %104 = tpu.matmul %103, %93, %cst_35 {dimension_numbers = #tpu.dot_dimension_numbers<[1], [0], [0], [1], [0, 0, 1, 1], [], []>} : vector<8x8xbf16>, vector<8x8xbf16>, vector<8x8xf32> -> vector<8x8xf32>
    %105 = tpu.reciprocal %102 {approx = true} : vector<8x1xf32> -> vector<8x1xf32>
    %106 = vector.broadcast %105 : vector<8x1xf32> to vector<8x8xf32>
    %107 = arith.mulf %104, %106 : vector<8x8xf32>
    %108 = arith.truncf %107 : vector<8x8xf32> to vector<8x8xbf16>
    %c3 = arith.constant 3 : index
    %c0_36 = arith.constant 0 : index
    %c0_37 = arith.constant 0 : index
    %109 = vector.load %arg5[%c3, %c0_36, %c0_37] : memref<4x8x32xbf16, #tpu.memory_space<vmem>>, vector<1x8x32xbf16>
    %110 = vector.shape_cast %109 : vector<1x8x32xbf16> to vector<8x32xbf16>
    %cst_38 = arith.constant dense<0.000000e+00> : vector<8x32xf32>
    %111 = tpu.matmul %108, %110, %cst_38 {dimension_numbers = #tpu.dot_dimension_numbers<[1], [0], [0], [1], [0, 0, 1, 1], [], []>} : vector<8x8xbf16>, vector<8x32xbf16>, vector<8x32xf32> -> vector<8x32xf32>
    %112 = arith.addf %87, %111 : vector<8x32xf32>
    %c0_39 = arith.constant 0 : index
    %c0_40 = arith.constant 0 : index
    %113 = vector.load %arg6[%c0_39, %c0_40] : memref<1x32xf32, #tpu.memory_space<vmem>>, vector<1x32xf32>
    %114 = vector.broadcast %113 : vector<1x32xf32> to vector<8x32xf32>
    %115 = arith.addf %112, %114 : vector<8x32xf32>
    %116 = arith.addf %115, %1 : vector<8x32xf32>
    %cst_41 = arith.constant dense<0.000000e+00> : vector<8xf32>
    %117 = vector.multi_reduction <add>, %116, %cst_41 [1] : vector<8x32xf32> to vector<8xf32>
    %118 = vector.shape_cast %117 : vector<8xf32> to vector<8x1xf32>
    %cst_42 = arith.constant 3.200000e+01 : f32
    %119 = vector.broadcast %cst_42 : f32 to vector<8x1xf32>
    %120 = arith.divf %118, %119 : vector<8x1xf32>
    %121 = vector.broadcast %120 : vector<8x1xf32> to vector<8x32xf32>
    %122 = arith.subf %116, %121 : vector<8x32xf32>
    %123 = arith.mulf %122, %122 : vector<8x32xf32>
    %cst_43 = arith.constant dense<0.000000e+00> : vector<8xf32>
    %124 = vector.multi_reduction <add>, %123, %cst_43 [1] : vector<8x32xf32> to vector<8xf32>
    %125 = vector.shape_cast %124 : vector<8xf32> to vector<8x1xf32>
    %cst_44 = arith.constant 3.200000e+01 : f32
    %126 = vector.broadcast %cst_44 : f32 to vector<8x1xf32>
    %127 = arith.divf %125, %126 : vector<8x1xf32>
    %128 = vector.broadcast %120 : vector<8x1xf32> to vector<8x32xf32>
    %129 = arith.subf %116, %128 : vector<8x32xf32>
    %cst_45 = arith.constant 9.99999974E-6 : f32
    %130 = vector.broadcast %cst_45 : f32 to vector<8x1xf32>
    %131 = arith.addf %127, %130 : vector<8x1xf32>
    %132 = math.rsqrt %131 : vector<8x1xf32>
    %133 = vector.broadcast %132 : vector<8x1xf32> to vector<8x32xf32>
    %134 = arith.mulf %129, %133 : vector<8x32xf32>
    %c0_46 = arith.constant 0 : index
    %c0_47 = arith.constant 0 : index
    %135 = vector.load %arg7[%c0_46, %c0_47] : memref<1x32xf32, #tpu.memory_space<vmem>>, vector<1x32xf32>
    %136 = vector.broadcast %135 : vector<1x32xf32> to vector<8x32xf32>
    %137 = arith.mulf %134, %136 : vector<8x32xf32>
    %c0_48 = arith.constant 0 : index
    %c0_49 = arith.constant 0 : index
    %138 = vector.load %arg8[%c0_48, %c0_49] : memref<1x32xf32, #tpu.memory_space<vmem>>, vector<1x32xf32>
    %139 = vector.broadcast %138 : vector<1x32xf32> to vector<8x32xf32>
    %140 = arith.addf %137, %139 : vector<8x32xf32>
    %c0_50 = arith.constant 0 : index
    %c0_51 = arith.constant 0 : index
    %c0_52 = arith.constant 0 : index
    %141 = vector.load %arg9[%c0_50, %c0_51, %c0_52] : memref<1x8x32xf32, #tpu.memory_space<vmem>>, vector<1x8x32xf32>
    %142 = vector.shape_cast %141 : vector<1x8x32xf32> to vector<8x32xf32>
    %143 = vector.shape_cast %140 : vector<8x32xf32> to vector<1x8x32xf32>
    tpu.vector_store %arg9[%c0_50, %c0_51, %c0_52], %143 {strides = array<i32>} : memref<1x8x32xf32, #tpu.memory_space<vmem>>, vector<1x8x32xf32>,
    return
  }
  func.func @transform_0(%arg0: i32) -> (i32, i32, i32) {
    %c0_i32 = arith.constant 0 : i32
    %c0_i32_0 = arith.constant 0 : i32
    %c0_i32_1 = arith.constant 0 : i32
    return %arg0, %c0_i32, %c0_i32_0 : i32, i32, i32
  }
  func.func @transform_1(%arg0: i32) -> (i32, i32, i32) {
    %c0_i32 = arith.constant 0 : i32
    %c0_i32_0 = arith.constant 0 : i32
    %c0_i32_1 = arith.constant 0 : i32
    return %arg0, %c0_i32, %c0_i32_0 : i32, i32, i32
  }
  func.func @transform_2(%arg0: i32) -> (i32, i32) {
    %c0_i32 = arith.constant 0 : i32
    %c0_i32_0 = arith.constant 0 : i32
    %c0_i32_1 = arith.constant 0 : i32
    return %c0_i32, %c0_i32_0 : i32, i32
  }
  func.func @transform_3(%arg0: i32) -> (i32, i32) {
    %c0_i32 = arith.constant 0 : i32
    %c0_i32_0 = arith.constant 0 : i32
    %c0_i32_1 = arith.constant 0 : i32
    return %c0_i32, %c0_i32_0 : i32, i32
  }
  func.func @transform_4(%arg0: i32) -> (i32, i32, i32) {
    %c0_i32 = arith.constant 0 : i32
    %c0_i32_0 = arith.constant 0 : i32
    %c0_i32_1 = arith.constant 0 : i32
    %c0_i32_2 = arith.constant 0 : i32
    return %c0_i32, %c0_i32_0, %c0_i32_1 : i32, i32, i32
  }
  func.func @transform_5(%arg0: i32) -> (i32, i32) {
    %c0_i32 = arith.constant 0 : i32
    %c0_i32_0 = arith.constant 0 : i32
    %c0_i32_1 = arith.constant 0 : i32
    return %c0_i32, %c0_i32_0 : i32, i32
  }
  func.func @transform_6(%arg0: i32) -> (i32, i32) {
    %c0_i32 = arith.constant 0 : i32
    %c0_i32_0 = arith.constant 0 : i32
    %c0_i32_1 = arith.constant 0 : i32
    return %c0_i32, %c0_i32_0 : i32, i32
  }
  func.func @transform_7(%arg0: i32) -> (i32, i32) {
    %c0_i32 = arith.constant 0 : i32
    %c0_i32_0 = arith.constant 0 : i32
    %c0_i32_1 = arith.constant 0 : i32
    return %c0_i32, %c0_i32_0 : i32, i32
  }
  func.func @transform_8(%arg0: i32) -> (i32, i32, i32) {
    %c0_i32 = arith.constant 0 : i32
    %c0_i32_0 = arith.constant 0 : i32
    %c0_i32_1 = arith.constant 0 : i32
    return %arg0, %c0_i32, %c0_i32_0 : i32, i32, i32
  }
}

module attributes {stable_mosaic.version = 11 : i64} {
  func.func @_mha_kernel(%arg0: i32, %arg1: memref<1x8x32xf32, #tpu.memory_space<vmem>>, %arg2: memref<1x1x8xf32, #tpu.memory_space<vmem>>, %arg3: memref<32x96xbf16, #tpu.memory_space<vmem>>, %arg4: memref<1x96xf32, #tpu.memory_space<vmem>>, %arg5: memref<4x8x32xbf16, #tpu.memory_space<vmem>>, %arg6: memref<1x32xf32, #tpu.memory_space<vmem>>, %arg7: memref<1x32xf32, #tpu.memory_space<vmem>>, %arg8: memref<1x32xf32, #tpu.memory_space<vmem>>, %arg9: memref<1x8x32xf32, #tpu.memory_space<vmem>>) attributes {dimension_semantics = [#tpu.dimension_semantics<parallel>], iteration_bounds = array<i64: 2>, scalar_prefetch = 0 : i64, scratch_operands = 0 : i64, tpu.core_type = #tpu.core_type<tc>, window_params = [{transform_indices = @transform_0, window_bounds = array<i64: 1, 8, 32>}, {transform_indices = @transform_1, window_bounds = array<i64: 1, 1, 8>}, {pipeline_mode = #tpu.pipeline_mode<synchronous>, transform_indices = @transform_2, window_bounds = array<i64: 32, 96>}, {pipeline_mode = #tpu.pipeline_mode<synchronous>, transform_indices = @transform_3, window_bounds = array<i64: 1, 96>}, {pipeline_mode = #tpu.pipeline_mode<synchronous>, transform_indices = @transform_4, window_bounds = array<i64: 4, 8, 32>}, {pipeline_mode = #tpu.pipeline_mode<synchronous>, transform_indices = @transform_5, window_bounds = array<i64: 1, 32>}, {pipeline_mode = #tpu.pipeline_mode<synchronous>, transform_indices = @transform_6, window_bounds = array<i64: 1, 32>}, {pipeline_mode = #tpu.pipeline_mode<synchronous>, transform_indices = @transform_7, window_bounds = array<i64: 1, 32>}, {transform_indices = @transform_8, window_bounds = array<i64: 1, 8, 32>}]} {
    %c0 = arith.constant 0 : index
    %c0_0 = arith.constant 0 : index
    %c0_1 = arith.constant 0 : index
    %0 = vector.load %arg1[%c0, %c0_0, %c0_1] : memref<1x8x32xf32, #tpu.memory_space<vmem>>, vector<1x8x32xf32>
    %1 = vector.shape_cast %0 : vector<1x8x32xf32> to vector<8x32xf32>
    %2 = arith.truncf %1 : vector<8x32xf32> to vector<8x32xbf16>
    %c0_2 = arith.constant 0 : index
    %c0_3 = arith.constant 0 : index
    %3 = vector.load %arg3[%c0_2, %c0_3] : memref<32x96xbf16, #tpu.memory_space<vmem>>, vector<32x96xbf16>
    %cst = arith.constant dense<0.000000e+00> : vector<8x96xf32>
    %4 = tpu.matmul %2, %3, %cst {dimension_numbers = #tpu.dot_dimension_numbers<[1], [0], [0], [1], [0, 0, 1, 1], [], []>} : vector<8x32xbf16>, vector<32x96xbf16>, vector<8x96xf32> -> vector<8x96xf32>
    %c0_4 = arith.constant 0 : index
    %c0_5 = arith.constant 0 : index
    %5 = vector.load %arg4[%c0_4, %c0_5] : memref<1x96xf32, #tpu.memory_space<vmem>>, vector<1x96xf32>
    %6 = vector.broadcast %5 : vector<1x96xf32> to vector<8x96xf32>
    %7 = arith.addf %4, %6 : vector<8x96xf32>
    %c0_6 = arith.constant 0 : index
    %c0_7 = arith.constant 0 : index
    %c0_8 = arith.constant 0 : index
    %8 = vector.load %arg2[%c0_6, %c0_7, %c0_8] : memref<1x1x8xf32, #tpu.memory_space<vmem>>, vector<1x1x8xf32>
    %9 = vector.shape_cast %8 : vector<1x1x8xf32> to vector<1x8xf32>
    %10 = vector.shape_cast %9 : vector<1x8xf32> to vector<1x8xf32>
    %11 = vector.broadcast %10 : vector<1x8xf32> to vector<8x8xf32>
    %cst_9 = arith.constant 0.000000e+00 : f32
    %12 = vector.broadcast %cst_9 : f32 to vector<8x32xf32>
    %13 = vector.extract_strided_slice %7 {offsets = [0, 0], sizes = [8, 8], strides = [1, 1]} : vector<8x96xf32> to vector<8x8xf32>
    %14 = arith.truncf %13 : vector<8x8xf32> to vector<8x8xbf16>
    %15 = vector.extract_strided_slice %7 {offsets = [0, 32], sizes = [8, 8], strides = [1, 1]} : vector<8x96xf32> to vector<8x8xf32>
    %16 = arith.truncf %15 : vector<8x8xf32> to vector<8x8xbf16>
    %17 = vector.extract_strided_slice %7 {offsets = [0, 64], sizes = [8, 8], strides = [1, 1]} : vector<8x96xf32> to vector<8x8xf32>
    %18 = arith.truncf %17 : vector<8x8xf32> to vector<8x8xbf16>
    %cst_10 = arith.constant dense<0.000000e+00> : vector<8x8xf32>
    %19 = tpu.matmul %14, %16, %cst_10 {dimension_numbers = #tpu.dot_dimension_numbers<[1], [1], [0], [0], [0, 0, 1, 0], [], []>} : vector<8x8xbf16>, vector<8x8xbf16>, vector<8x8xf32> -> vector<8x8xf32>
    %20 = arith.addf %19, %11 : vector<8x8xf32>
    %cst_11 = arith.constant dense<0xFF800000> : vector<8xf32>
    %21 = vector.multi_reduction <maximumf>, %20, %cst_11 [1] : vector<8x8xf32> to vector<8xf32>
    %22 = vector.shape_cast %21 : vector<8xf32> to vector<8x1xf32>
    %23 = vector.broadcast %22 : vector<8x1xf32> to vector<8x8xf32>
    %24 = arith.subf %20, %23 : vector<8x8xf32>
    %25 = math.exp %24 : vector<8x8xf32>
    %cst_12 = arith.constant dense<0.000000e+00> : vector<8xf32>
    %26 = vector.multi_reduction <add>, %25, %cst_12 [1] : vector<8x8xf32> to vector<8xf32>
    %27 = vector.shape_cast %26 : vector<8xf32> to vector<8x1xf32>
    %28 = arith.truncf %25 : vector<8x8xf32> to vector<8x8xbf16>
    %cst_13 = arith.constant dense<0.000000e+00> : vector<8x8xf32>
    %29 = tpu.matmul %28, %18, %cst_13 {dimension_numbers = #tpu.dot_dimension_numbers<[1], [0], [0], [1], [0, 0, 1, 1], [], []>} : vector<8x8xbf16>, vector<8x8xbf16>, vector<8x8xf32> -> vector<8x8xf32>
    %30 = tpu.reciprocal %27 {approx = true} : vector<8x1xf32> -> vector<8x1xf32>
    %31 = vector.broadcast %30 : vector<8x1xf32> to vector<8x8xf32>
    %32 = arith.mulf %29, %31 : vector<8x8xf32>
    %33 = arith.truncf %32 : vector<8x8xf32> to vector<8x8xbf16>
    %c0_14 = arith.constant 0 : index
    %c0_15 = arith.constant 0 : index
    %c0_16 = arith.constant 0 : index
    %34 = vector.load %arg5[%c0_14, %c0_15, %c0_16] : memref<4x8x32xbf16, #tpu.memory_space<vmem>>, vector<1x8x32xbf16>
    %35 = vector.shape_cast %34 : vector<1x8x32xbf16> to vector<8x32xbf16>
    %cst_17 = arith.constant dense<0.000000e+00> : vector<8x32xf32>
    %36 = tpu.matmul %33, %35, %cst_17 {dimension_numbers = #tpu.dot_dimension_numbers<[1], [0], [0], [1], [0, 0, 1, 1], [], []>} : vector<8x8xbf16>, vector<8x32xbf16>, vector<8x32xf32> -> vector<8x32xf32>
    %37 = arith.addf %12, %36 : vector<8x32xf32>
    %38 = vector.extract_strided_slice %7 {offsets = [0, 8], sizes = [8, 8], strides = [1, 1]} : vector<8x96xf32> to vector<8x8xf32>
    %39 = arith.truncf %38 : vector<8x8xf32> to vector<8x8xbf16>
    %40 = vector.extract_strided_slice %7 {offsets = [0, 40], sizes = [8, 8], strides = [1, 1]} : vector<8x96xf32> to vector<8x8xf32>
    %41 = arith.truncf %40 : vector<8x8xf32> to vector<8x8xbf16>
    %42 = vector.extract_strided_slice %7 {offsets = [0, 72], sizes = [8, 8], strides = [1, 1]} : vector<8x96xf32> to vector<8x8xf32>
    %43 = arith.truncf %42 : vector<8x8xf32> to vector<8x8xbf16>
    %cst_18 = arith.constant dense<0.000000e+00> : vector<8x8xf32>
    %44 = tpu.matmul %39, %41, %cst_18 {dimension_numbers = #tpu.dot_dimension_numbers<[1], [1], [0], [0], [0, 0, 1, 0], [], []>} : vector<8x8xbf16>, vector<8x8xbf16>, vector<8x8xf32> -> vector<8x8xf32>
    %45 = arith.addf %44, %11 : vector<8x8xf32>
    %cst_19 = arith.constant dense<0xFF800000> : vector<8xf32>
    %46 = vector.multi_reduction <maximumf>, %45, %cst_19 [1] : vector<8x8xf32> to vector<8xf32>
    %47 = vector.shape_cast %46 : vector<8xf32> to vector<8x1xf32>
    %48 = vector.broadcast %47 : vector<8x1xf32> to vector<8x8xf32>
    %49 = arith.subf %45, %48 : vector<8x8xf32>
    %50 = math.exp %49 : vector<8x8xf32>
    %cst_20 = arith.constant dense<0.000000e+00> : vector<8xf32>
    %51 = vector.multi_reduction <add>, %50, %cst_20 [1] : vector<8x8xf32> to vector<8xf32>
    %52 = vector.shape_cast %51 : vector<8xf32> to vector<8x1xf32>
    %53 = arith.truncf %50 : vector<8x8xf32> to vector<8x8xbf16>
    %cst_21 = arith.constant dense<0.000000e+00> : vector<8x8xf32>
    %54 = tpu.matmul %53, %43, %cst_21 {dimension_numbers = #tpu.dot_dimension_numbers<[1], [0], [0], [1], [0, 0, 1, 1], [], []>} : vector<8x8xbf16>, vector<8x8xbf16>, vector<8x8xf32> -> vector<8x8xf32>
    %55 = tpu.reciprocal %52 {approx = true} : vector<8x1xf32> -> vector<8x1xf32>
    %56 = vector.broadcast %55 : vector<8x1xf32> to vector<8x8xf32>
    %57 = arith.mulf %54, %56 : vector<8x8xf32>
    %58 = arith.truncf %57 : vector<8x8xf32> to vector<8x8xbf16>
    %c1 = arith.constant 1 : index
    %c0_22 = arith.constant 0 : index
    %c0_23 = arith.constant 0 : index
    %59 = vector.load %arg5[%c1, %c0_22, %c0_23] : memref<4x8x32xbf16, #tpu.memory_space<vmem>>, vector<1x8x32xbf16>
    %60 = vector.shape_cast %59 : vector<1x8x32xbf16> to vector<8x32xbf16>
    %cst_24 = arith.constant dense<0.000000e+00> : vector<8x32xf32>
    %61 = tpu.matmul %58, %60, %cst_24 {dimension_numbers = #tpu.dot_dimension_numbers<[1], [0], [0], [1], [0, 0, 1, 1], [], []>} : vector<8x8xbf16>, vector<8x32xbf16>, vector<8x32xf32> -> vector<8x32xf32>
    %62 = arith.addf %37, %61 : vector<8x32xf32>
    %63 = vector.extract_strided_slice %7 {offsets = [0, 16], sizes = [8, 8], strides = [1, 1]} : vector<8x96xf32> to vector<8x8xf32>
    %64 = arith.truncf %63 : vector<8x8xf32> to vector<8x8xbf16>
    %65 = vector.extract_strided_slice %7 {offsets = [0, 48], sizes = [8, 8], strides = [1, 1]} : vector<8x96xf32> to vector<8x8xf32>
    %66 = arith.truncf %65 : vector<8x8xf32> to vector<8x8xbf16>
    %67 = vector.extract_strided_slice %7 {offsets = [0, 80], sizes = [8, 8], strides = [1, 1]} : vector<8x96xf32> to vector<8x8xf32>
    %68 = arith.truncf %67 : vector<8x8xf32> to vector<8x8xbf16>
    %cst_25 = arith.constant dense<0.000000e+00> : vector<8x8xf32>
    %69 = tpu.matmul %64, %66, %cst_25 {dimension_numbers = #tpu.dot_dimension_numbers<[1], [1], [0], [0], [0, 0, 1, 0], [], []>} : vector<8x8xbf16>, vector<8x8xbf16>, vector<8x8xf32> -> vector<8x8xf32>
    %70 = arith.addf %69, %11 : vector<8x8xf32>
    %cst_26 = arith.constant dense<0xFF800000> : vector<8xf32>
    %71 = vector.multi_reduction <maximumf>, %70, %cst_26 [1] : vector<8x8xf32> to vector<8xf32>
    %72 = vector.shape_cast %71 : vector<8xf32> to vector<8x1xf32>
    %73 = vector.broadcast %72 : vector<8x1xf32> to vector<8x8xf32>
    %74 = arith.subf %70, %73 : vector<8x8xf32>
    %75 = math.exp %74 : vector<8x8xf32>
    %cst_27 = arith.constant dense<0.000000e+00> : vector<8xf32>
    %76 = vector.multi_reduction <add>, %75, %cst_27 [1] : vector<8x8xf32> to vector<8xf32>
    %77 = vector.shape_cast %76 : vector<8xf32> to vector<8x1xf32>
    %78 = arith.truncf %75 : vector<8x8xf32> to vector<8x8xbf16>
    %cst_28 = arith.constant dense<0.000000e+00> : vector<8x8xf32>
    %79 = tpu.matmul %78, %68, %cst_28 {dimension_numbers = #tpu.dot_dimension_numbers<[1], [0], [0], [1], [0, 0, 1, 1], [], []>} : vector<8x8xbf16>, vector<8x8xbf16>, vector<8x8xf32> -> vector<8x8xf32>
    %80 = tpu.reciprocal %77 {approx = true} : vector<8x1xf32> -> vector<8x1xf32>
    %81 = vector.broadcast %80 : vector<8x1xf32> to vector<8x8xf32>
    %82 = arith.mulf %79, %81 : vector<8x8xf32>
    %83 = arith.truncf %82 : vector<8x8xf32> to vector<8x8xbf16>
    %c2 = arith.constant 2 : index
    %c0_29 = arith.constant 0 : index
    %c0_30 = arith.constant 0 : index
    %84 = vector.load %arg5[%c2, %c0_29, %c0_30] : memref<4x8x32xbf16, #tpu.memory_space<vmem>>, vector<1x8x32xbf16>
    %85 = vector.shape_cast %84 : vector<1x8x32xbf16> to vector<8x32xbf16>
    %cst_31 = arith.constant dense<0.000000e+00> : vector<8x32xf32>
    %86 = tpu.matmul %83, %85, %cst_31 {dimension_numbers = #tpu.dot_dimension_numbers<[1], [0], [0], [1], [0, 0, 1, 1], [], []>} : vector<8x8xbf16>, vector<8x32xbf16>, vector<8x32xf32> -> vector<8x32xf32>
    %87 = arith.addf %62, %86 : vector<8x32xf32>
    %88 = vector.extract_strided_slice %7 {offsets = [0, 24], sizes = [8, 8], strides = [1, 1]} : vector<8x96xf32> to vector<8x8xf32>
    %89 = arith.truncf %88 : vector<8x8xf32> to vector<8x8xbf16>
    %90 = vector.extract_strided_slice %7 {offsets = [0, 56], sizes = [8, 8], strides = [1, 1]} : vector<8x96xf32> to vector<8x8xf32>
    %91 = arith.truncf %90 : vector<8x8xf32> to vector<8x8xbf16>
    %92 = vector.extract_strided_slice %7 {offsets = [0, 88], sizes = [8, 8], strides = [1, 1]} : vector<8x96xf32> to vector<8x8xf32>
    %93 = arith.truncf %92 : vector<8x8xf32> to vector<8x8xbf16>
    %cst_32 = arith.constant dense<0.000000e+00> : vector<8x8xf32>
    %94 = tpu.matmul %89, %91, %cst_32 {dimension_numbers = #tpu.dot_dimension_numbers<[1], [1], [0], [0], [0, 0, 1, 0], [], []>} : vector<8x8xbf16>, vector<8x8xbf16>, vector<8x8xf32> -> vector<8x8xf32>
    %95 = arith.addf %94, %11 : vector<8x8xf32>
    %cst_33 = arith.constant dense<0xFF800000> : vector<8xf32>
    %96 = vector.multi_reduction <maximumf>, %95, %cst_33 [1] : vector<8x8xf32> to vector<8xf32>
    %97 = vector.shape_cast %96 : vector<8xf32> to vector<8x1xf32>
    %98 = vector.broadcast %97 : vector<8x1xf32> to vector<8x8xf32>
    %99 = arith.subf %95, %98 : vector<8x8xf32>
    %100 = math.exp %99 : vector<8x8xf32>
    %cst_34 = arith.constant dense<0.000000e+00> : vector<8xf32>
    %101 = vector.multi_reduction <add>, %100, %cst_34 [1] : vector<8x8xf32> to vector<8xf32>
    %102 = vector.shape_cast %101 : vector<8xf32> to vector<8x1xf32>
    %103 = arith.truncf %100 : vector<8x8xf32> to vector<8x8xbf16>
    %cst_35 = arith.constant dense<0.000000e+00> : vector<8x8xf32>
    %104 = tpu.matmul %103, %93, %cst_35 {dimension_numbers = #tpu.dot_dimension_numbers<[1], [0], [0], [1], [0, 0, 1, 1], [], []>} : vector<8x8xbf16>, vector<8x8xbf16>, vector<8x8xf32> -> vector<8x8xf32>
    %105 = tpu.reciprocal %102 {approx = true} : vector<8x1xf32> -> vector<8x1xf32>
    %106 = vector.broadcast %105 : vector<8x1xf32> to vector<8x8xf32>
    %107 = arith.mulf %104, %106 : vector<8x8xf32>
    %108 = arith.truncf %107 : vector<8x8xf32> to vector<8x8xbf16>
    %c3 = arith.constant 3 : index
    %c0_36 = arith.constant 0 : index
    %c0_37 = arith.constant 0 : index
    %109 = vector.load %arg5[%c3, %c0_36, %c0_37] : memref<4x8x32xbf16, #tpu.memory_space<vmem>>, vector<1x8x32xbf16>
    %110 = vector.shape_cast %109 : vector<1x8x32xbf16> to vector<8x32xbf16>
    %cst_38 = arith.constant dense<0.000000e+00> : vector<8x32xf32>
    %111 = tpu.matmul %108, %110, %cst_38 {dimension_numbers = #tpu.dot_dimension_numbers<[1], [0], [0], [1], [0, 0, 1, 1], [], []>} : vector<8x8xbf16>, vector<8x32xbf16>, vector<8x32xf32> -> vector<8x32xf32>
    %112 = arith.addf %87, %111 : vector<8x32xf32>
    %c0_39 = arith.constant 0 : index
    %c0_40 = arith.constant 0 : index
    %113 = vector.load %arg6[%c0_39, %c0_40] : memref<1x32xf32, #tpu.memory_space<vmem>>, vector<1x32xf32>
    %114 = vector.broadcast %113 : vector<1x32xf32> to vector<8x32xf32>
    %115 = arith.addf %112, %114 : vector<8x32xf32>
    %116 = arith.addf %115, %1 : vector<8x32xf32>
    %cst_41 = arith.constant dense<0.000000e+00> : vector<8xf32>
    %117 = vector.multi_reduction <add>, %116, %cst_41 [1] : vector<8x32xf32> to vector<8xf32>
    %118 = vector.shape_cast %117 : vector<8xf32> to vector<8x1xf32>
    %cst_42 = arith.constant 3.200000e+01 : f32
    %119 = vector.broadcast %cst_42 : f32 to vector<8x1xf32>
    %120 = arith.divf %118, %119 : vector<8x1xf32>
    %121 = vector.broadcast %120 : vector<8x1xf32> to vector<8x32xf32>
    %122 = arith.subf %116, %121 : vector<8x32xf32>
    %123 = arith.mulf %122, %122 : vector<8x32xf32>
    %cst_43 = arith.constant dense<0.000000e+00> : vector<8xf32>
    %124 = vector.multi_reduction <add>, %123, %cst_43 [1] : vector<8x32xf32> to vector<8xf32>
    %125 = vector.shape_cast %124 : vector<8xf32> to vector<8x1xf32>
    %cst_44 = arith.constant 3.200000e+01 : f32
    %126 = vector.broadcast %cst_44 : f32 to vector<8x1xf32>
    %127 = arith.divf %125, %126 : vector<8x1xf32>
    %128 = vector.broadcast %120 : vector<8x1xf32> to vector<8x32xf32>
    %129 = arith.subf %116, %128 : vector<8x32xf32>
    %cst_45 = arith.constant 9.99999974E-6 : f32
    %130 = vector.broadcast %cst_45 : f32 to vector<8x1xf32>
    %131 = arith.addf %127, %130 : vector<8x1xf32>
    %132 = math.rsqrt %131 : vector<8x1xf32>
    %133 = vector.broadcast %132 : vector<8x1xf32> to vector<8x32xf32>
    %134 = arith.mulf %129, %133 : vector<8x32xf32>
    %c0_46 = arith.constant 0 : index
    %c0_47 = arith.constant 0 : index
    %135 = vector.load %arg7[%c0_46, %c0_47] : memref<1x32xf32, #tpu.memory_space<vmem>>, vector<1x32xf32>
    %136 = vector.broadcast %135 : vector<1x32xf32> to vector<8x32xf32>
    %137 = arith.mulf %134, %136 : vector<8x32xf32>
    %c0_48 = arith.constant 0 : index
    %c0_49 = arith.constant 0 : index
    %138 = vector.load %arg8[%c0_48, %c0_49] : memref<1x32xf32, #tpu.memory_space<vmem>>, vector<1x32xf32>
    %139 = vector.broadcast %138 : vector<1x32xf32> to vector<8x32xf32>
    %140 = arith.addf %137, %139 : vector<8x32xf32>
    %c0_50 = arith.constant 0 : index
    %c0_51 = arith.constant 0 : index
    %c0_52 = arith.constant 0 : index
    %141 = vector.load %arg9[%c0_50, %c0_51, %c0_52] : memref<1x8x32xf32, #tpu.memory_space<vmem>>, vector<1x8x32xf32>
    %142 = vector.shape_cast %141 : vector<1x8x32xf32> to vector<8x32xf32>
    %143 = vector.shape_cast %140 : vector<8x32xf32> to vector<1x8x32xf32>
    tpu.vector_store %arg9[%c0_50, %c0_51, %c0_52], %143 {strides = array<i32>} : memref<1x8x32xf32, #tpu.memory_space<vmem>>, vector<1x8x32xf32>,
    return
  }
  func.func @transform_0(%arg0: i32) -> (i32, i32, i32) {
    %c0_i32 = arith.constant 0 : i32
    %c0_i32_0 = arith.constant 0 : i32
    %c0_i32_1 = arith.constant 0 : i32
    return %arg0, %c0_i32, %c0_i32_0 : i32, i32, i32
  }
  func.func @transform_1(%arg0: i32) -> (i32, i32, i32) {
    %c0_i32 = arith.constant 0 : i32
    %c0_i32_0 = arith.constant 0 : i32
    %c0_i32_1 = arith.constant 0 : i32
    return %arg0, %c0_i32, %c0_i32_0 : i32, i32, i32
  }
  func.func @transform_2(%arg0: i32) -> (i32, i32) {
    %c0_i32 = arith.constant 0 : i32
    %c0_i32_0 = arith.constant 0 : i32
    %c0_i32_1 = arith.constant 0 : i32
    return %c0_i32, %c0_i32_0 : i32, i32
  }
  func.func @transform_3(%arg0: i32) -> (i32, i32) {
    %c0_i32 = arith.constant 0 : i32
    %c0_i32_0 = arith.constant 0 : i32
    %c0_i32_1 = arith.constant 0 : i32
    return %c0_i32, %c0_i32_0 : i32, i32
  }
  func.func @transform_4(%arg0: i32) -> (i32, i32, i32) {
    %c0_i32 = arith.constant 0 : i32
    %c0_i32_0 = arith.constant 0 : i32
    %c0_i32_1 = arith.constant 0 : i32
    %c0_i32_2 = arith.constant 0 : i32
    return %c0_i32, %c0_i32_0, %c0_i32_1 : i32, i32, i32
  }
  func.func @transform_5(%arg0: i32) -> (i32, i32) {
    %c0_i32 = arith.constant 0 : i32
    %c0_i32_0 = arith.constant 0 : i32
    %c0_i32_1 = arith.constant 0 : i32
    return %c0_i32, %c0_i32_0 : i32, i32
  }
  func.func @transform_6(%arg0: i32) -> (i32, i32) {
    %c0_i32 = arith.constant 0 : i32
    %c0_i32_0 = arith.constant 0 : i32
    %c0_i32_1 = arith.constant 0 : i32
    return %c0_i32, %c0_i32_0 : i32, i32
  }
  func.func @transform_7(%arg0: i32) -> (i32, i32) {
    %c0_i32 = arith.constant 0 : i32
    %c0_i32_0 = arith.constant 0 : i32
    %c0_i32_1 = arith.constant 0 : i32
    return %c0_i32, %c0_i32_0 : i32, i32
  }
  func.func @transform_8(%arg0: i32) -> (i32, i32, i32) {
    %c0_i32 = arith.constant 0 : i32
    %c0_i32_0 = arith.constant 0 : i32
    %c0_i32_1 = arith.constant 0 : i32
    return %arg0, %c0_i32, %c0_i32_0 : i32, i32, i32
  }
}

</mosaic_0001>

<bundles_post_ra>
// kernel: sketch_multihead_attention.1
= control target key start
LH: loop header
LB: loop body
LE: loop exit
PB: predicated region body
PF: predicated region fallthrough
CT: control target
= control target key end

     0   :  { %s2056_s0 = inlined_call_operand.hbm [shape: f32[2,8,32], index: 0, kind: input, shape index: {}]   ;;  %s2057_s1 = inlined_call_operand.vmem [shape: f32[2,1,8], index: 1, kind: input, shape index: {}]   ;;  %s2058_s2 = inlined_call_operand.hbm [shape: bf16[32,96], index: 2, kind: input, shape index: {}]   ;;  %s2059_s3 = inlined_call_operand.vmem [shape: f32[1,96], index: 3, kind: input, shape index: {}]   ;;  %s2060_s4 = inlined_call_operand.hbm [shape: bf16[4,8,32], index: 4, kind: input, shape index: {}]   ;;  %s2061_s5 = inlined_call_operand.vmem [shape: f32[1,32], index: 5, kind: input, shape index: {}]   ;;  %s2062_s6 = inlined_call_operand.vmem [shape: f32[1,32], index: 6, kind: input, shape index: {}]   ;;  %s2063_s7 = inlined_call_operand.hbm [shape: f32[1,32], index: 7, kind: input, shape index: {}]   ;;  %s2064_s8 = inlined_call_operand.hbm [shape: f32[2,8,32], index: 8, kind: output, shape index: {}]  }
   0x1   :  { %2069 = sst [smem:[#allocation15_spill]] %s2058_s2 }
   0x2   :  { %2070 = sst [smem:[#allocation16_spill]] %s2060_s4 }
   0x3   :  { %2071 = sst [smem:[#allocation17_spill]] %s2063_s7 }
   0x4   :  { %13 = vsyncpa [#allocation3], 0 }
   0x5   :  { %15 = vsyncpa [#allocation3 + $0x1], 0 }
   0x6   :  { %16 = vsyncpa [#allocation6], 0 }
   0x7   :  { %17 = vsyncpa [#allocation9], 0 }
   0x8   :  { %18 = vsyncpa [#allocation4], 0 }
   0x9   :  { %20 = vsyncpa [#allocation4 + $0x1], 0  ;;  %s1757_s27 = smov 0   ;;  %s1759_s28 = smov 0  }
   0xa   :  { %s1761_s29 = smov 0   ;;  %s1763_s30 = smov 0  }
   0xb LB: > { %s1778_s9 = sadd.s32 4294967295, %s1690_s30   ;;  %s1255_s10 = sadd.s32 4294967294, %s1690_s30   ;;  %s1690_s30 = sphi %s1763_s30, %s2094_s30   ;;  %s1686_s29 = sphi %s1761_s29, %s2093_s29   ;;  %s1682_s28 = sphi %s1759_s28, %s2092_s28   ;;  %s1678_s27 = sphi %s1757_s27, %s2091_s27  }
   0xc   : > { %p46_p0 = scmp.ne.s32.totalorder %s1682_s28, %s1678_s27  ;;  %p2065_p1 = scmp.eq.s32.totalorder %s1778_s9, 0 }
   0xd   : > { %p228_p3 = scmp.eq.s32.totalorder %s1255_s10, 1  ;;  %p1256_p5 = scmp.ge.s32.totalorder %s1690_s30, 1 }
   0xe   : > { %p1787_p4 = por %p2065_p1, %p46_p0  ;;  %p235_p7 = scmp.lt.s32.totalorder %s1690_s30, 3 }
   0xf   : > { %p1792_p6 = por %p228_p3, %p46_p0  ;;  %s1692_s14 = smov [#allocation5]  }
  0x10   : > { %s2072_s11 = scalar_select %p1787_p4, 1, 0 }
  0x11   : > { %s2073_s12 = scalar_select %p1792_p6, 1, 0 }
  0x12   : > { %p1797_p8 = pnand %p1256_p5, %p235_p7  ;;  %s247_s15 = sshll.u32 %s1692_s14, 4  ;;  %s248_s15 = int_to_ptr.vmem [resolvable:$true] %s247_s15 }
  0x13   : > { %s1693_s17 = smov [#allocation7]   ;;  %s1694_s19 = smov [#allocation8]  }
  0x14   : > { %s2074_s13 = scalar_select %p1797_p8, 1, 0 }
  0x15   : > { %p1416_p9 = pneg %p1797_p8  ;;  %s263_s18 = sshll.u32 %s1693_s17, 4  ;;  %s264_s18 = int_to_ptr.vmem [resolvable:$true] %s263_s18 }
  0x16   : > { %s283_s20 = sshll.u32 %s1694_s19, 4  ;;  %s1523_s21 = scalar_lea.vmem %s248_s15, 256  ;;  %s284_s20 = int_to_ptr.vmem [resolvable:$true] %s283_s20 }
  0x17   : > { %p1806_p11 = pnand %p1416_p9, %p2065_p1  ;;  %p1524_p13 = scmp.ne.s32.totalorder %s248_s15, %s1523_s21 }
  0x18   : > { %p1531_p5 = scmp.lt.s32.totalorder %s248_s15, %s248_s15  ;;  %p1532_p7 = scmp.lt.s32.totalorder %s1523_s21, %s1523_s21 }
  0x19   : > { %p1514_p12 = pneg %p1806_p11 }
  0x1a   : > { %p1533_p9 = por %p1532_p7, %p1531_p5 }
  0x1b   : > { %p1526_p0 = pnand %p1524_p13, %p1514_p12 }
  0x1d   : > { %p1527_p3 = pneg %p1526_p0 }
  0x1f   : > { %p1534_p10 = pnand %p1533_p9, %p1527_p3 }
  0x21   : > { %1537 = shalt.err (!%p1534_p10)
}
  0x22   : > { %s1695_s22 = smov 64   ;;  %s1696_s23 = smov 4  }
  0x23   : > { %s2076_s2 = sld [smem:[#allocation15_spill]]  ;;  %s1549_s26 = scalar_lea.vmem %s264_s18, 256 }
  0x24   : > { %p1550_p1 = scmp.ne.s32.totalorder %s264_s18, %s1549_s26  ;;  %p1557_p2 = scmp.lt.s32.totalorder %s264_s18, %s264_s18 }
  0x25   : > { %p1558_p6 = scmp.lt.s32.totalorder %s1549_s26, %s1549_s26 }
  0x26   : > { %p1552_p13 = pnand %p1550_p1, %p1514_p12 }
  0x27   : > { %p1559_p5 = por %p1558_p6, %p1557_p2 }
  0x28   : > { %p1553_p0 = pneg %p1552_p13 }
  0x29   : > { %1419 = dma.hbm_to_vmem [thread:$0]  (!%p1806_p11), %s2076_s2, 256, %s248_s15, [#allocation6], %s1695_s22, %s1695_s22, %s1696_s23  }
  0x2a   : > { %p1560_p3 = pnand %p1559_p5, %p1553_p0 }
  0x2c   : > { %1563 = shalt.err (!%p1560_p3)
}
  0x2d   : > { %s2077_s4 = sld [smem:[#allocation16_spill]]  ;;  %s1575_s15 = scalar_lea.vmem %s284_s20, 16 }
  0x2e   : > { %p1576_p10 = scmp.ne.s32.totalorder %s284_s20, %s1575_s15  ;;  %s1582_s17 = scalar_lea.vmem %s284_s20, 32 }
  0x2f   : > { %p1583_p9 = scmp.lt.s32.totalorder %s284_s20, %s284_s20  ;;  %p1584_p13 = scmp.lt.s32.totalorder %s1582_s17, %s1575_s15 }
  0x30   : > { %p1578_p7 = pnand %p1576_p10, %p1514_p12 }
  0x31   : > { %p1585_p2 = por %p1584_p13, %p1583_p9 }
  0x32   : > { %p1579_p1 = pneg %p1578_p7 }
  0x33   : > { %1422 = dma.hbm_to_vmem [thread:$0]  (!%p1806_p11), %s2077_s4, 256, %s264_s18, [#allocation6], %s1695_s22, %s1695_s22, %s1696_s23  }
  0x34   : > { %p1586_p6 = pnand %p1585_p2, %p1579_p1 }
  0x36   : > { %1589 = shalt.err (!%p1586_p6)
}
  0x37   : > { %s2078_s7 = sld [smem:[#allocation17_spill]]  ;;  %s1837_s18 = sadd.s32 1, %s1690_s30  }
  0x38   : > { %s30_s22 = ssub.s32 %s1690_s30, %s1837_s18  ;;  %s33_s16 = sadd.s32 1, %s1686_s29 }
  0x39   : > { %p31_p12 = scmp.eq.s32.totalorder %s30_s22, 0  ;;  %p40_p0 = scmp.ne.s32.totalorder %s1686_s29, %s1682_s28 }
  0x3a   : > { %p41_p5 = scmp.eq.s32.totalorder %s1690_s30, 0  ;;  %p1437_p3 = scmp.lt.s32.totalorder %s1690_s30, 2 }
  0x3b   : > { %s1847_s23 = scalar_select %p31_p12, %s1686_s29, %s33_s16  }
  0x3c   : > { %p42_p10 = por %p41_p5, %p40_p0  ;;  %p2079_p7 = scmp.eq.s32.totalorder %s1778_s9, 1 }
  0x3d   : > { %1425 = dma.hbm_to_vmem [thread:$0]  (!%p1806_p11), %s2078_s7, 16, %s284_s20, [#allocation9]  }
  0x3e   : > { %p1851_p1 = por %p2079_p7, %p40_p0  ;;  %s294_s25 = sand.u32 1, %s1686_s29  }
  0x3f   : > { %s1262_s26 = sshll.u32 %s1690_s30, 7  ;;  %s1261_s20 = sshll.u32 %s294_s25, 3 }
  0x40   : > { %s2080_s24 = scalar_select %p1851_p1, 1, 0 }
  0x41   : > { %s1860_s15 = scalar_lea.hbm %s2056_s0, %s1262_s26  ;;  %s298_s17 = scalar_lea.vmem [#allocation2], %s1261_s20 }
  0x42   : > { %s305_s19 = sshll.u32 %s298_s17, 4  ;;  %p1862_p11 = pnand %p1437_p3, %p42_p10  ;;  %s306_s19 = int_to_ptr.vmem [resolvable:$true] %s305_s19 }
  0x43   : > { %s295_s22 = scalar_lea.sflag [#allocation3], %s294_s25  ;;  %s1590_s16 = scalar_lea.hbm %s1860_s15, 128 }
  0x44   : > { %p1591_p9 = scmp.ne.s32.totalorder %s1860_s15, %s1590_s16  ;;  %p1592_p13 = pneg %p1862_p11 }
  0x45   : > { %s1595_s14 = scalar_lea.hbm %s2056_s0, 256  ;;  %p1596_p12 = scmp.lt.s32.totalorder %s1860_s15, %s2056_s0 }
  0x46   : > { %p1593_p2 = pnand %p1592_p13, %p1591_p9  ;;  %p1597_p0 = scmp.lt.s32.totalorder %s1595_s14, %s1590_s16 }
  0x48   : > { %p1594_p6 = pneg %p1593_p2  ;;  %p1598_p5 = por %p1597_p0, %p1596_p12 }
  0x4a   : > { %p1599_p3 = pnand %p1598_p5, %p1594_p6 }
  0x4c   : > { %1602 = shalt.err (!%p1599_p3)
}
  0x4d   : > { %s1603_s17 = scalar_lea.vmem %s306_s19, 128  ;;  %s1697_s25 = smov [#allocation2]  }
  0x4e   : > { %p1604_p10 = scmp.ne.s32.totalorder %s306_s19, %s1603_s17  ;;  %s1608_s4 = sshll.u32 %s1697_s25, 4  ;;  %s1609_s4 = int_to_ptr.vmem [resolvable:$false] %s1608_s4 }
  0x4f   : > { %s1610_s7 = scalar_lea.vmem %s1609_s4, 256  ;;  %p1611_p9 = scmp.lt.s32.totalorder %s306_s19, %s1609_s4 }
  0x50   : > { %p1606_p7 = pnand %p1604_p10, %p1592_p13  ;;  %p1612_p2 = scmp.lt.s32.totalorder %s1610_s7, %s1603_s17 }
  0x52   : > { %p1607_p1 = pneg %p1606_p7  ;;  %p1613_p4 = por %p1612_p2, %p1611_p9 }
  0x54   : > { %p1614_p8 = pnand %p1613_p4, %p1607_p1 }
  0x56   : > { %1617 = shalt.err (!%p1614_p8)
}
  0x57   : > { %1429 = dma.hbm_to_vmem [thread:$0]  (!%p1862_p11), %s1860_s15, 128, %s306_s19, %s295_s22  }
  0x58   : > { %p2082_p6 = scmp.ne.s32.totalorder %s2074_s13, 0 }
  0x59   : > { %s1883_s2 = sand.u32 (!%p2082_p6), 1, %s1682_s28   ;;  %p2083_p4 = scmp.ne.s32.totalorder (!%p2082_p6), %s2072_s11, 0 }
  0x5a   : > { %320 = sbr.rel (%p2082_p6) target bundleno = 2433 (0x981), region = 52  ;;  %s1264_s16 = sshll.u32 (!%p2082_p6), %s1883_s2, 3 }
  0x5b   : > { %s323_s4 = scalar_lea.sflag (!%p2082_p6), [#allocation3], %s1883_s2  ;;  %s326_s7 = scalar_lea.vmem (!%p2082_p6), [#allocation2], %s1264_s16 }
  0x5f   : > { %1661 = dma.done.wait (%p2083_p4), %s323_s4, 128  }
  0x60   : > { %1663 = vsyncadd (%p2083_p4), %s323_s4, 4294967168  ;;  %p2084_p8 = scmp.eq.s32.totalorder %s1778_s9, 0 }
  0x62   : > { %1665 = dma.done.wait (%p2084_p8), [#allocation6], 512   ;;  %p2085_p1 = pmov %p2084_p8 }
  0x64   : > { %1667 = vsyncadd (%p2085_p1), [#allocation6], 4294966784  ;;  %p2086_p11 = pmov %p2085_p1 }
  0x65   : > { %p2087_p13 = pmov %p2085_p1 }
  0x66   : > { %1669 = dma.done.wait (%p2086_p11), [#allocation9], 16  }
  0x67   : > { %1671 = vsyncadd (%p2087_p13), [#allocation9], 4294967280  ;;  %v1698_v0 = vmov 0.0   ;;  %vm1699_vm0 = vmmov 0   ;;  %v1492_v1 = vld [vmem:[#allocation5 + $0x8] sm:$0xff]   ;;  %v1493_v2 = vld [vmem:[#allocation5] sm:$0xff]  }
  0x68   : > { %1320 = vmatprep.subr.bf16.mxu0 %v1698_v0  ;;  %1324 = vmatprep.mubr.msk.bf16.mxu0 %vm1699_vm0, %v1698_v0  ;;  %v1907_v3 = vld [vmem:[%s326_s7] sm:$0xff]  ;;  %vm403_vm1 = vcmask 261120   ;;  %s1700_s15 = smov 120   ;;  %s1701_s19 = smov 96   ;;  %vm458_vm2 = vcmask 64512   ;;  %vm520_vm3 = vcmask 1043456  }
  0x69   : > { %1328 = vmatprep.subr.bf16.mxu1 %v1698_v0  ;;  %1330 = vmatprep.mubr.msk.bf16.mxu1 %vm1699_vm0, %v1698_v0  ;;  %v379_v4 = vpack.c.bf16 %v1907_v3, %v1907_v3  ;;  %v1269_v5 = vld [vmem:[%s2059_s3] ss:$0 sm:$0xff]  ;;  %s1702_s21 = smov 88   ;;  %p374_p12 = scmp.lt.s32.totalorder %s1778_s9, 1  ;;  %v680_v48 = vld [vmem:[#allocation7 + $0x4] sm:$0xf] }
  0x6a   : > { %1321 = vmatpush3.bf16.msra.mxu0 %v1492_v1  ;;  %s1703_s20 = smov 56   ;;  %s1704_s17 = smov 64   ;;  %v567_v46 = vld [vmem:[#allocation7] sm:$0xf]  ;;  %v685_v49 = vsel %vm520_vm3, %v680_v48, 0 }
  0x6b   : > { %1322 = vmatprep.subr.bf16.mxu0 %v1698_v0  ;;  %s375_s22 = scalar_select %p374_p12, %s1778_s9, 1  ;;  %v731_v47 = vsel %vm520_vm3, %v567_v46, 0 }
  0x6c   : > { %s1705_s25 = smov 80   ;;  %s1706_s4 = smov 112  }
  0x6d   : > { %s376_s14 = scalar_lea.vmem %s2057_s1, %s375_s22  ;;  %s1707_s7 = smov 72  }
  0x6e   : > { %1323 = vmatpush3.bf16.msra.mxu0 %v1493_v2  ;;  %v1940_v17 = vld [vmem:[%s376_s14] ss:$0 sm:$0xff]  ;;  %s1708_s11 = smov 48   ;;  %s1709_s13 = smov 104  }
  0x6f   : > { %1334 = vmatprep.subr.bf16.mxu0 %v1698_v0  ;;  %s1290_s10 = sshll.u32 %s1778_s9, 7  ;;  %s373_s14 = scalar_lea.vmem [#allocation10], %s1264_s16 }
  0x70   : > { %p2088_p5 = scmp.ne.s32.totalorder %s2080_s24, 0 }
  0x71   : > { %1325 = vmatmul.mubr.msk.bf16.vlgmr.msra.gmra.mxu0 %vm403_vm1, %v379_v4 }
  0x72   : > { %1336 = vmatprep.mubr.msk.bf16.mxu0 %vm1699_vm0, %v1698_v0 }
 0x131   : > { %v441_v6 = vpop.f32.mrf.mxu0 }
 0x132   : > { %v442_v7 = vadd.f32 %v1269_v5, %v441_v6 }
 0x133   : > { %v1326_v8 = vpop.f32.mrf.mxu0 }
 0x134   : > { %v1919_v9 = vpack.c.bf16 %v442_v7, %v442_v7 }
 0x135   : > { %v444_v10 = vpop.f32.mrf.mxu0 }
 0x136   : > { %568 = vrot.lane.b32.xlu1 %v1919_v9, %s1700_s15  ;;  %456 = vrot.lane.b32.xlu0 %v1919_v9, %s1701_s19  ;;  %s1710_s15 = smov 40  }
 0x137   : > { %v1327_v11 = vpop.f32.mrf.mxu0 }
 0x13a   : > { %570 = vrot.lane.b32.xlu0 %v1919_v9, %s1702_s21 }
 0x1a8   : > { %v457_v12 = vpop.permute.xlu0 %456  ;;  %v569_v16 = vpop.permute.xlu1 %568 }
 0x1a9   : > { %v463_v13 = vsel %vm458_vm2, %v457_v12, 0 }
 0x1aa   : > { %1329 = vmatpush3.bf16.xpose.msra.mxu1 %v463_v13 }
 0x1ab   : > { %1340 = vmatprep.subr.bf16.mxu1 %v1698_v0 }
 0x1ac   : > { %v571_v14 = vpop.permute.xlu0 %570 }
 0x1ad   : > { %v576_v15 = vsel %vm458_vm2, %v571_v14, 0 }
 0x1b1   : > { %1331 = vmatmul.mubr.msk.bf16.vlgmr.msra.gmra.mxu1 %vm458_vm2, %v1919_v9 }
 0x1b2   : > { %1341 = vmatpush3.bf16.xpose.msra.mxu1 %v576_v15  ;;  %1342 = vmatprep.mubr.msk.bf16.mxu1 %vm1699_vm0, %v1698_v0 }
 0x1b3   : > { %1352 = vmatprep.subr.bf16.mxu1 %v1698_v0 }
 0x1b9   : > { %1343 = vmatmul.mubr.msk.bf16.vlgmr.msra.gmra.mxu1 %vm458_vm2, %v569_v16 }
 0x1ba   : > { %1354 = vmatprep.mubr.msk.bf16.mxu1 %vm1699_vm0, %v1698_v0  ;;  %1353 = vmatpush3.bf16.msra.mxu1 %v685_v49 }
 0x1bb   : > { %1364 = vmatprep.subr.bf16.mxu1 %v1698_v0 }
 0x271   : > { %v499_v18 = vpop.f32.mrf.mxu1 }
 0x272   : > { %v500_v19 = vadd.f32 %v1940_v17, %v499_v18 }
 0x273   : > { %v1332_v20 = vpop.f32.mrf.mxu1 }
 0x274   : > { %v505_v21 = vsel %vm458_vm2, %v500_v19, -inf }
 0x275   : > { %506 = vmax.xlane.f32.xlu1 %v505_v21  ;;  %v502_v22 = vpop.f32.mrf.mxu1 }
 0x277   : > { %v1333_v23 = vpop.f32.mrf.mxu1 }
 0x279   : > { %v612_v24 = vpop.f32.mrf.mxu1 }
 0x27a   : > { %v613_v25 = vadd.f32 %v1940_v17, %v612_v24 }
 0x27b   : > { %v1344_v26 = vpop.f32.mrf.mxu1 }
 0x27c   : > { %v618_v27 = vsel %vm458_vm2, %v613_v25, -inf }
 0x27d   : > { %619 = vmax.xlane.f32.xlu0 %v618_v27  ;;  %v615_v28 = vpop.f32.mrf.mxu1 }
 0x27f   : > { %v1345_v29 = vpop.f32.mrf.mxu1 }
 0x286   : > { %628 = vrot.lane.b32.xlu1 %v1919_v9, %s1703_s20  ;;  %s1147_s20 = sshll.u32 %s373_s14, 4  ;;  %s1148_s20 = int_to_ptr.vmem [resolvable:$true] %s1147_s20 }
 0x293   : > { %515 = vrot.lane.b32.xlu0 %v1919_v9, %s1704_s17 }
 0x297   : > { %775 = vrot.lane.b32.xlu0 %v1919_v9, %s1705_s25 }
 0x29b   : > { %773 = vrot.lane.b32.xlu0 %v1919_v9, %s1706_s4  ;;  %s1145_s4 = scalar_lea.hbm %s2064_s8, %s1290_s10 }
 0x2fe   : > { %v507_v30 = vpop.xlane.xlu1 %506 }
 0x2ff   : > { %v508_v31 = vsub.f32 %v500_v19, %v507_v30 }
 0x301   : > { %v509_v32 = vmul.f32 1.442695, %v508_v31 }
 0x302   : > { %v629_v39 = vpop.permute.xlu1 %628 }
 0x303   : > { %1494 = vpow2.f32 %v509_v32  ;;  %v634_v42 = vsel %vm520_vm3, %v629_v39, 0 }
 0x306   : > { %v620_v33 = vpop.xlane.xlu0 %619 }
 0x307   : > { %v621_v34 = vsub.f32 %v613_v25, %v620_v33 }
 0x309   : > { %v622_v35 = vmul.f32 1.442695, %v621_v34 }
 0x30a   : > { %v516_v36 = vpop.permute.xlu0 %515 }
 0x30b   : > { %1496 = vpow2.f32 %v622_v35  ;;  %v522_v37 = vsel %vm520_vm3, %v516_v36, 0  ;;  %v885_v35 = vld [vmem:[#allocation7 + $0x8] sm:$0xf] }
 0x30c   : > { %1335 = vmatpush3.bf16.msra.mxu0 %v522_v37  ;;  %v890_v36 = vsel %vm520_vm3, %v885_v35, 0 }
 0x30d   : > { %1346 = vmatprep.subr.bf16.mxu0 %v1698_v0 }
 0x30e   : > { %v776_v50 = vpop.permute.xlu0 %775 }
 0x30f   : > { %v781_v5 = vsel %vm458_vm2, %v776_v50, 0 }
 0x310   : > { %v1495_v38 = vpop.eup %1494 }
 0x311   : > { %v511_v40 = vsel %vm458_vm2, %v1495_v38, 0.0  ;;  %v514_v41 = vpack.c.bf16 %v1495_v38, %v1495_v38 }
 0x312   : > { %512 = vadd.xlane.f32.xlu0 %v511_v40  ;;  %v774_v51 = vpop.permute.xlu0 %773 }
 0x313   : > { %1337 = vmatmul.mubr.msk.bf16.vlgmr.msra.gmra.mxu0 %vm458_vm2, %v514_v41 }
 0x314   : > { %1347 = vmatpush3.bf16.msra.mxu0 %v634_v42  ;;  %1348 = vmatprep.mubr.msk.bf16.mxu0 %vm1699_vm0, %v1698_v0 }
 0x315   : > { %1358 = vmatprep.subr.bf16.mxu0 %v1698_v0 }
 0x318   : > { %v1497_v43 = vpop.eup %1496 }
 0x319   : > { %v624_v44 = vsel %vm458_vm2, %v1497_v43, 0.0  ;;  %v627_v45 = vpack.c.bf16 %v1497_v43, %v1497_v43 }
 0x31a   : > { %625 = vadd.xlane.f32.xlu1 %v624_v44 }
 0x31b   : > { %1349 = vmatmul.mubr.msk.bf16.vlgmr.msra.gmra.mxu0 %vm458_vm2, %v627_v45 }
 0x31c   : > { %1360 = vmatprep.mubr.msk.bf16.mxu0 %vm1699_vm0, %v1698_v0  ;;  %1359 = vmatpush3.bf16.msra.mxu0 %v731_v47 }
 0x31d   : > { %1370 = vmatprep.subr.bf16.mxu0 %v1698_v0 }
 0x328   : > { %935 = vrot.lane.b32.xlu0 %v1919_v9, %s1707_s7  ;;  %s1134_s7 = scalar_lea.sflag [#allocation4], %s1883_s2 }
 0x39b   : > { %v513_v52 = vpop.xlane.xlu0 %512 }
 0x39c   : > { %1498 = vrcp.f32 %v513_v52 }
 0x39f   : > { %v936_v30 = vpop.permute.xlu0 %935 }
 0x3a0   : > { %v941_v33 = vsel %vm458_vm2, %v936_v30, 0  ;;  %v1288_v30 = vld [vmem:[#allocation8] ss:$0 sm:$0xff] }
 0x3a3   : > { %v626_v53 = vpop.xlane.xlu1 %625 }
 0x3a4   : > { %1500 = vrcp.f32 %v626_v53 }
 0x3a9   : > { %v1499_v54 = vpop.eup %1498 }
 0x3b1   : > { %v1501_v61 = vpop.eup %1500 }
 0x3d3   : > { %v558_v55 = vpop.f32.mrf.mxu0 }
 0x3d4   : > { %v565_v56 = vmul.f32 %v1499_v54, %v558_v55 }
 0x3d5   : > { %v1338_v57 = vpop.f32.mrf.mxu0 }
 0x3d6   : > { %v566_v58 = vpack.c.bf16 %v565_v56, %v565_v56  ;;  %v1045_v57 = vld [vmem:[#allocation7 + $0xc] sm:$0xf] }
 0x3d7   : > { %v561_v59 = vpop.f32.mrf.mxu0 }
 0x3d8   : > { %1361 = vmatmul.mubr.msk.bf16.vlgmr.msra.gmra.mxu0 %vm458_vm2, %v566_v58  ;;  %v1050_v58 = vsel %vm520_vm3, %v1045_v57, 0 }
 0x3d9   : > { %v1339_v60 = vpop.f32.mrf.mxu0  ;;  %1372 = vmatprep.mubr.msk.bf16.mxu0 %vm1699_vm0, %v1698_v0 }
 0x3db   : > { %v670_v62 = vpop.f32.mrf.mxu0 }
 0x3dc   : > { %v677_v63 = vmul.f32 %v1501_v61, %v670_v62 }
 0x3dd   : > { %v1350_v1 = vpop.f32.mrf.mxu0 }
 0x3de   : > { %v678_v2 = vpack.c.bf16 %v677_v63, %v677_v63 }
 0x3df   : > { %v673_v4 = vpop.f32.mrf.mxu0 }
 0x3e0   : > { %1355 = vmatmul.mubr.msk.bf16.vlgmr.msra.gmra.mxu1 %vm458_vm2, %v678_v2 }
 0x3e1   : > { %1365 = vmatpush3.bf16.xpose.msra.mxu1 %v781_v5  ;;  %v1351_v6 = vpop.f32.mrf.mxu0  ;;  %1366 = vmatprep.mubr.msk.bf16.mxu1 %vm1699_vm0, %v1698_v0 }
 0x3e2   : > { %1376 = vmatprep.subr.bf16.mxu1 %v1698_v0 }
 0x3e8   : > { %1367 = vmatmul.mubr.msk.bf16.vlgmr.msra.gmra.mxu1 %vm458_vm2, %v774_v51 }
 0x3e9   : > { %1378 = vmatprep.mubr.msk.bf16.mxu1 %vm1699_vm0, %v1698_v0  ;;  %1377 = vmatpush3.bf16.msra.mxu1 %v890_v36 }
 0x3ea   : > { %1388 = vmatprep.subr.bf16.mxu1 %v1698_v0 }
 0x498   : > { %v767_v7 = vpop.f32.mrf.mxu0 }
 0x49a   : > { %v1362_v8 = vpop.f32.mrf.mxu0 }
 0x49c   : > { %v770_v10 = vpop.f32.mrf.mxu0 }
 0x49e   : > { %v1363_v11 = vpop.f32.mrf.mxu0 }
 0x49f   : > { %v1286_v11 = vld [vmem:[%s2061_s5] ss:$0 sm:$0xff] }
 0x4a0   : > { %v721_v12 = vpop.f32.mrf.mxu1 }
 0x4a1   : > { %v1978_v13 = vadd.f32 %v767_v7, %v721_v12 }
 0x4a2   : > { %v1356_v14 = vpop.f32.mrf.mxu1 }
 0x4a4   : > { %v724_v15 = vpop.f32.mrf.mxu1 }
 0x4a6   : > { %v1357_v16 = vpop.f32.mrf.mxu1 }
 0x4a8   : > { %v817_v18 = vpop.f32.mrf.mxu1 }
 0x4a9   : > { %v818_v19 = vadd.f32 %v1940_v17, %v817_v18 }
 0x4aa   : > { %v1368_v20 = vpop.f32.mrf.mxu1 }
 0x4ab   : > { %v823_v21 = vsel %vm458_vm2, %v818_v19, -inf }
 0x4ac   : > { %824 = vmax.xlane.f32.xlu1 %v823_v21  ;;  %v820_v22 = vpop.f32.mrf.mxu1 }
 0x4ae   : > { %v1369_v23 = vpop.f32.mrf.mxu1 }
 0x4bd   : > { %833 = vrot.lane.b32.xlu1 %v1919_v9, %s1708_s11  ;;  %s1618_s11 = scalar_lea.vmem %s1148_s20, 128 }
 0x4be   : > { %p1619_p0 = scmp.ne.s32.totalorder %s1148_s20, %s1618_s11 }
 0x4c0   : > { %p1620_p3 = pnand %p1619_p0, %p2088_p5 }
 0x4c1   : > { %933 = vrot.lane.b32.xlu1 %v1919_v9, %s1709_s13  ;;  %s1711_s13 = smov [#allocation10]  }
 0x4c2   : > { %p1621_p10 = pneg %p1620_p3  ;;  %s1622_s9 = sshll.u32 %s1711_s13, 4  ;;  %s1623_s9 = int_to_ptr.vmem [resolvable:$false] %s1622_s9 }
 0x4c3   : > { %s1624_s16 = scalar_lea.vmem %s1623_s9, 256  ;;  %p1625_p7 = scmp.lt.s32.totalorder %s1148_s20, %s1623_s9 }
 0x4c4   : > { %p1626_p9 = scmp.lt.s32.totalorder %s1624_s16, %s1618_s11 }
 0x4c6   : > { %p1627_p2 = por %p1626_p9, %p1625_p7 }
 0x4c8   : > { %p1628_p6 = pnand %p1627_p2, %p1621_p10 }
 0x535   : > { %v825_v24 = vpop.xlane.xlu1 %824 }
 0x536   : > { %v826_v25 = vsub.f32 %v818_v19, %v825_v24 }
 0x538   : > { %v827_v26 = vmul.f32 1.442695, %v826_v25 }
 0x539   : > { %v834_v27 = vpop.permute.xlu1 %833 }
 0x53a   : > { %1502 = vpow2.f32 %v827_v26  ;;  %v839_v28 = vsel %vm520_vm3, %v834_v27, 0 }
 0x53b   : > { %1371 = vmatpush3.bf16.msra.mxu0 %v839_v28  ;;  %v1287_v28 = vld [vmem:[%s2062_s6] ss:$0 sm:$0xff] }
 0x53c   : > { %1382 = vmatprep.subr.bf16.mxu0 %v1698_v0 }
 0x53d   : > { %v934_v34 = vpop.permute.xlu1 %933 }
 0x547   : > { %v1503_v29 = vpop.eup %1502 }
 0x548   : > { %v829_v31 = vsel %vm458_vm2, %v1503_v29, 0.0  ;;  %v832_v32 = vpack.c.bf16 %v1503_v29, %v1503_v29 }
 0x549   : > { %830 = vadd.xlane.f32.xlu1 %v829_v31 }
 0x54a   : > { %1373 = vmatmul.mubr.msk.bf16.vlgmr.msra.gmra.mxu0 %vm458_vm2, %v832_v32 }
 0x54b   : > { %1383 = vmatpush3.bf16.xpose.msra.mxu0 %v941_v33  ;;  %1384 = vmatprep.mubr.msk.bf16.mxu0 %vm1699_vm0, %v1698_v0 }
 0x54c   : > { %1394 = vmatprep.subr.bf16.mxu0 %v1698_v0 }
 0x552   : > { %1385 = vmatmul.mubr.msk.bf16.vlgmr.msra.gmra.mxu0 %vm458_vm2, %v934_v34 }
 0x553   : > { %1396 = vmatprep.mubr.msk.bf16.mxu0 %vm1699_vm0, %v1698_v0  ;;  %1395 = vmatpush3.bf16.msra.mxu0 %v1050_v58 }
 0x5d2   : > { %v831_v37 = vpop.xlane.xlu1 %830 }
 0x5d3   : > { %1504 = vrcp.f32 %v831_v37 }
 0x5e0   : > { %v1505_v38 = vpop.eup %1504 }
 0x60a   : > { %v875_v39 = vpop.f32.mrf.mxu0 }
 0x60b   : > { %v882_v40 = vmul.f32 %v1505_v38, %v875_v39 }
 0x60c   : > { %v1374_v41 = vpop.f32.mrf.mxu0 }
 0x60d   : > { %v883_v42 = vpack.c.bf16 %v882_v40, %v882_v40 }
 0x60e   : > { %v878_v43 = vpop.f32.mrf.mxu0 }
 0x60f   : > { %1379 = vmatmul.mubr.msk.bf16.vlgmr.msra.gmra.mxu1 %vm458_vm2, %v883_v42 }
 0x610   : > { %v1375_v44 = vpop.f32.mrf.mxu0  ;;  %1390 = vmatprep.mubr.msk.bf16.mxu1 %vm1699_vm0, %v1698_v0 }
 0x612   : > { %v977_v45 = vpop.f32.mrf.mxu0 }
 0x613   : > { %v978_v46 = vadd.f32 %v1940_v17, %v977_v45 }
 0x614   : > { %v1386_v47 = vpop.f32.mrf.mxu0 }
 0x615   : > { %v983_v48 = vsel %vm458_vm2, %v978_v46, -inf }
 0x616   : > { %984 = vmax.xlane.f32.xlu0 %v983_v48  ;;  %v980_v49 = vpop.f32.mrf.mxu0 }
 0x618   : > { %v1387_v50 = vpop.f32.mrf.mxu0 }
 0x62c   : > { %993 = vrot.lane.b32.xlu0 %v1919_v9, %s1710_s15 }
 0x69f   : > { %v985_v51 = vpop.xlane.xlu0 %984 }
 0x6a0   : > { %v986_v52 = vsub.f32 %v978_v46, %v985_v51 }
 0x6a2   : > { %v987_v53 = vmul.f32 1.442695, %v986_v52 }
 0x6a3   : > { %v994_v54 = vpop.permute.xlu0 %993 }
 0x6a4   : > { %1506 = vpow2.f32 %v987_v53  ;;  %v999_v55 = vsel %vm520_vm3, %v994_v54, 0 }
 0x6a5   : > { %1389 = vmatpush3.bf16.msra.mxu1 %v999_v55 }
 0x6b1   : > { %v1507_v0 = vpop.eup %1506 }
 0x6b2   : > { %v989_v17 = vsel %vm458_vm2, %v1507_v0, 0.0  ;;  %v992_v56 = vpack.c.bf16 %v1507_v0, %v1507_v0 }
 0x6b3   : > { %990 = vadd.xlane.f32.xlu1 %v989_v17 }
 0x6b4   : > { %1391 = vmatmul.mubr.msk.bf16.vlgmr.msra.gmra.mxu1 %vm458_vm2, %v992_v56 }
 0x6cf   : > { %v926_v9 = vpop.f32.mrf.mxu1 }
 0x6d0   : > { %v932_v59 = vadd.f32 %v926_v9, %v1978_v13 }
 0x6d1   : > { %v1380_v60 = vpop.f32.mrf.mxu1 }
 0x6d3   : > { %v929_v61 = vpop.f32.mrf.mxu1 }
 0x6d5   : > { %v1381_v62 = vpop.f32.mrf.mxu1 }
 0x73c   : > { %v991_v63 = vpop.xlane.xlu1 %990 }
 0x73d   : > { %1508 = vrcp.f32 %v991_v63 }
 0x74a   : > { %v1509_v1 = vpop.eup %1508 }
 0x774   : > { %v1035_v2 = vpop.f32.mrf.mxu1 }
 0x775   : > { %v1042_v4 = vmul.f32 %v1509_v1, %v1035_v2 }
 0x776   : > { %v1392_v5 = vpop.f32.mrf.mxu1 }
 0x777   : > { %v1043_v6 = vpack.c.bf16 %v1042_v4, %v1042_v4 }
 0x778   : > { %v1038_v7 = vpop.f32.mrf.mxu1 }
 0x779   : > { %1397 = vmatmul.mubr.msk.bf16.vlgmr.msra.gmra.mxu0 %vm458_vm2, %v1043_v6 }
 0x77a   : > { %v1393_v8 = vpop.f32.mrf.mxu1 }
 0x839   : > { %v1086_v10 = vpop.f32.mrf.mxu0 }
 0x83a   : > { %v1092_v12 = vadd.f32 %v1086_v10, %v932_v59 }
 0x83b   : > { %v1398_v13 = vpop.f32.mrf.mxu0 }
 0x83c   : > { %v1100_v14 = vadd.f32 %v1286_v11, %v1092_v12 }
 0x83d   : > { %v1089_v15 = vpop.f32.mrf.mxu0 }
 0x83e   : > { %v1101_v16 = vadd.f32 %v1100_v14, %v1907_v3 }
 0x83f   : > { %v1399_v18 = vpop.f32.mrf.mxu0 }
 0x840   : > { %v1102_v19 = vsel %vm403_vm1, %v1101_v16, 0.0 }
 0x841   : > { %1103 = vadd.xlane.f32.xlu1 %v1102_v19 }
 0x8ca   : > { %v1104_v20 = vpop.xlane.xlu1 %1103 }
 0x8cb   : > { %v1106_v21 = vmul.f32 0.03125, %v1104_v20 }
 0x8cd   : > { %v1107_v22 = vsub.f32 %v1101_v16, %v1106_v21 }
 0x8cf   : > { %v1108_v23 = vmul.f32 %v1107_v22, %v1107_v22 }
 0x8d1   : > { %v1109_v24 = vsel %vm403_vm1, %v1108_v23, 0.0 }
 0x8d2   : > { %1110 = vadd.xlane.f32.xlu1 %v1109_v24 }
 0x95b   : > { %v1111_v25 = vpop.xlane.xlu1 %1110 }
 0x95c   : > { %v1112_v26 = vmul.f32 0.03125, %v1111_v25 }
 0x95e   : > { %v1113_v27 = vadd.f32 1e-05, %v1112_v26 }
 0x960   : > { %1510 = vrsqrt.f32 %v1113_v27 }
 0x96d   : > { %v1511_v3 = vpop.eup %1510 }
 0x96e   : > { %v1115_v29 = vmul.f32 %v1511_v3, %v1107_v22 }
 0x970   : > { %v1123_v31 = vmul.f32 %v1287_v28, %v1115_v29 }
 0x972   : > { %v1131_v32 = vadd.f32 %v1288_v30, %v1123_v31 }
 0x974   : > { %1132 = vst.msk [vmem:[%s373_s14] sm:$0xff] %vm403_vm1, %v1131_v32 }
 0x975   : > { %1631 = shalt.err (!%p1628_p6)
}
 0x976   : > { %s1632_s15 = scalar_lea.hbm %s1145_s4, 128  ;;  %s1636_s21 = scalar_lea.hbm %s2064_s8, 256 }
 0x977   : > { %p1633_p4 = scmp.ne.s32.totalorder %s1145_s4, %s1632_s15  ;;  %p1637_p11 = scmp.lt.s32.totalorder %s1145_s4, %s2064_s8 }
 0x978   : > { %p1638_p13 = scmp.lt.s32.totalorder %s1636_s21, %s1632_s15 }
 0x979   : > { %p1634_p8 = pnand %p1633_p4, %p2088_p5 }
 0x97a   : > { %p1639_p12 = por %p1638_p13, %p1637_p11 }
 0x97b   : > { %p1635_p1 = pneg %p1634_p8 }
 0x97d   : > { %p1640_p0 = pnand %p1639_p12, %p1635_p1 }
 0x97f   : > { %1643 = shalt.err (!%p1640_p0)
}
 0x980   : > { %1414 = dma.vmem_to_hbm [thread:$0]  (%p2088_p5), %s1148_s20, 128, %s1145_s4, %s1134_s7  }
 0x981 PF: > { %s1159_s10 = sand.u32 1, %s1678_s27   ;;  %p2089_p3 = scmp.ne.s32.totalorder %s2073_s12, 0 }
 0x982   : > { %p2090_p10 = scmp.ge.s32.totalorder %s1690_s30, 2  ;;  %s1160_s14 = scalar_lea.sflag [#allocation4], %s1159_s10 }
 0x984   : > { %p1431_p7 = pnand %p2090_p10, %p2089_p3 }
 0x986   : > { %p1432_p9 = pneg %p1431_p7 }
 0x988   : > { %1673 = dma.done.wait (%p1432_p9), %s1160_s14, 128  }
 0x989   : > { %1675 = vsyncadd (%p1432_p9), %s1160_s14, 4294967168  ;;  %p23_p2 = scmp.ge.s32.totalorder %s1837_s18, 4   ;;  %s2091_s27 = smov %s1682_s28 }
 0x98a   : > { %s2092_s28 = smov %s1686_s29  ;;  %s2093_s29 = smov %s1847_s23 }
 0x98b   : > { %s2094_s30 = smov %s1837_s18  ;;  %25 = sbr.rel (!%p23_p2) target bundleno = 11 (0xb), region = 115 }
 0x990   :  { %1165 = vsyncpa [#allocation3], 1 }
 0x991   :  { %1167 = vsyncpa [#allocation3 + $0x1], 1 }
 0x992   :  { %1168 = vsyncpa [#allocation6], 1 }
 0x993   :  { %1169 = vsyncpa [#allocation9], 1 }
 0x994   :  { %1170 = vsyncpa [#allocation4], 1 }
 0x995   :  { %1172 = vsyncpa [#allocation4 + $0x1], 1 }

// kernel: sketch_multihead_attention.1
= control target key start
LH: loop header
LB: loop body
LE: loop exit
PB: predicated region body
PF: predicated region fallthrough
CT: control target
= control target key end

     0   :  { %s2056_s0 = inlined_call_operand.hbm [shape: f32[2,8,32], index: 0, kind: input, shape index: {}]   ;;  %s2057_s1 = inlined_call_operand.vmem [shape: f32[2,1,8], index: 1, kind: input, shape index: {}]   ;;  %s2058_s2 = inlined_call_operand.hbm [shape: bf16[32,96], index: 2, kind: input, shape index: {}]   ;;  %s2059_s3 = inlined_call_operand.vmem [shape: f32[1,96], index: 3, kind: input, shape index: {}]   ;;  %s2060_s4 = inlined_call_operand.hbm [shape: bf16[4,8,32], index: 4, kind: input, shape index: {}]   ;;  %s2061_s5 = inlined_call_operand.vmem [shape: f32[1,32], index: 5, kind: input, shape index: {}]   ;;  %s2062_s6 = inlined_call_operand.vmem [shape: f32[1,32], index: 6, kind: input, shape index: {}]   ;;  %s2063_s7 = inlined_call_operand.hbm [shape: f32[1,32], index: 7, kind: input, shape index: {}]   ;;  %s2064_s8 = inlined_call_operand.hbm [shape: f32[2,8,32], index: 8, kind: output, shape index: {}]  }
   0x1   :  { %2069 = sst [smem:[#allocation15_spill]] %s2058_s2 }
   0x2   :  { %2070 = sst [smem:[#allocation16_spill]] %s2060_s4 }
   0x3   :  { %2071 = sst [smem:[#allocation17_spill]] %s2063_s7 }
   0x4   :  { %13 = vsyncpa [#allocation3], 0 }
   0x5   :  { %15 = vsyncpa [#allocation3 + $0x1], 0 }
   0x6   :  { %16 = vsyncpa [#allocation6], 0 }
   0x7   :  { %17 = vsyncpa [#allocation9], 0 }
   0x8   :  { %18 = vsyncpa [#allocation4], 0 }
   0x9   :  { %20 = vsyncpa [#allocation4 + $0x1], 0  ;;  %s1757_s27 = smov 0   ;;  %s1759_s28 = smov 0  }
   0xa   :  { %s1761_s29 = smov 0   ;;  %s1763_s30 = smov 0  }
   0xb LB: > { %s1778_s9 = sadd.s32 4294967295, %s1690_s30   ;;  %s1255_s10 = sadd.s32 4294967294, %s1690_s30   ;;  %s1690_s30 = sphi %s1763_s30, %s2094_s30   ;;  %s1686_s29 = sphi %s1761_s29, %s2093_s29   ;;  %s1682_s28 = sphi %s1759_s28, %s2092_s28   ;;  %s1678_s27 = sphi %s1757_s27, %s2091_s27  }
   0xc   : > { %p46_p0 = scmp.ne.s32.totalorder %s1682_s28, %s1678_s27  ;;  %p2065_p1 = scmp.eq.s32.totalorder %s1778_s9, 0 }
   0xd   : > { %p228_p3 = scmp.eq.s32.totalorder %s1255_s10, 1  ;;  %p1256_p5 = scmp.ge.s32.totalorder %s1690_s30, 1 }
   0xe   : > { %p1787_p4 = por %p2065_p1, %p46_p0  ;;  %p235_p7 = scmp.lt.s32.totalorder %s1690_s30, 3 }
   0xf   : > { %p1792_p6 = por %p228_p3, %p46_p0  ;;  %s1692_s14 = smov [#allocation5]  }
  0x10   : > { %s2072_s11 = scalar_select %p1787_p4, 1, 0 }
  0x11   : > { %s2073_s12 = scalar_select %p1792_p6, 1, 0 }
  0x12   : > { %p1797_p8 = pnand %p1256_p5, %p235_p7  ;;  %s247_s15 = sshll.u32 %s1692_s14, 4  ;;  %s248_s15 = int_to_ptr.vmem [resolvable:$true] %s247_s15 }
  0x13   : > { %s1693_s17 = smov [#allocation7]   ;;  %s1694_s19 = smov [#allocation8]  }
  0x14   : > { %s2074_s13 = scalar_select %p1797_p8, 1, 0 }
  0x15   : > { %p1416_p9 = pneg %p1797_p8  ;;  %s263_s18 = sshll.u32 %s1693_s17, 4  ;;  %s264_s18 = int_to_ptr.vmem [resolvable:$true] %s263_s18 }
  0x16   : > { %s283_s20 = sshll.u32 %s1694_s19, 4  ;;  %s1523_s21 = scalar_lea.vmem %s248_s15, 256  ;;  %s284_s20 = int_to_ptr.vmem [resolvable:$true] %s283_s20 }
  0x17   : > { %p1806_p11 = pnand %p1416_p9, %p2065_p1  ;;  %p1524_p13 = scmp.ne.s32.totalorder %s248_s15, %s1523_s21 }
  0x18   : > { %p1531_p5 = scmp.lt.s32.totalorder %s248_s15, %s248_s15  ;;  %p1532_p7 = scmp.lt.s32.totalorder %s1523_s21, %s1523_s21 }
  0x19   : > { %p1514_p12 = pneg %p1806_p11 }
  0x1a   : > { %p1533_p9 = por %p1532_p7, %p1531_p5 }
  0x1b   : > { %p1526_p0 = pnand %p1524_p13, %p1514_p12 }
  0x1d   : > { %p1527_p3 = pneg %p1526_p0 }
  0x1f   : > { %p1534_p10 = pnand %p1533_p9, %p1527_p3 }
  0x21   : > { %1537 = shalt.err (!%p1534_p10)
}
  0x22   : > { %s1695_s22 = smov 64   ;;  %s1696_s23 = smov 4  }
  0x23   : > { %s2076_s2 = sld [smem:[#allocation15_spill]]  ;;  %s1549_s26 = scalar_lea.vmem %s264_s18, 256 }
  0x24   : > { %p1550_p1 = scmp.ne.s32.totalorder %s264_s18, %s1549_s26  ;;  %p1557_p2 = scmp.lt.s32.totalorder %s264_s18, %s264_s18 }
  0x25   : > { %p1558_p6 = scmp.lt.s32.totalorder %s1549_s26, %s1549_s26 }
  0x26   : > { %p1552_p13 = pnand %p1550_p1, %p1514_p12 }
  0x27   : > { %p1559_p5 = por %p1558_p6, %p1557_p2 }
  0x28   : > { %p1553_p0 = pneg %p1552_p13 }
  0x29   : > { %1419 = dma.hbm_to_vmem [thread:$0]  (!%p1806_p11), %s2076_s2, 256, %s248_s15, [#allocation6], %s1695_s22, %s1695_s22, %s1696_s23  }
  0x2a   : > { %p1560_p3 = pnand %p1559_p5, %p1553_p0 }
  0x2c   : > { %1563 = shalt.err (!%p1560_p3)
}
  0x2d   : > { %s2077_s4 = sld [smem:[#allocation16_spill]]  ;;  %s1575_s15 = scalar_lea.vmem %s284_s20, 16 }
  0x2e   : > { %p1576_p10 = scmp.ne.s32.totalorder %s284_s20, %s1575_s15  ;;  %s1582_s17 = scalar_lea.vmem %s284_s20, 32 }
  0x2f   : > { %p1583_p9 = scmp.lt.s32.totalorder %s284_s20, %s284_s20  ;;  %p1584_p13 = scmp.lt.s32.totalorder %s1582_s17, %s1575_s15 }
  0x30   : > { %p1578_p7 = pnand %p1576_p10, %p1514_p12 }
  0x31   : > { %p1585_p2 = por %p1584_p13, %p1583_p9 }
  0x32   : > { %p1579_p1 = pneg %p1578_p7 }
  0x33   : > { %1422 = dma.hbm_to_vmem [thread:$0]  (!%p1806_p11), %s2077_s4, 256, %s264_s18, [#allocation6], %s1695_s22, %s1695_s22, %s1696_s23  }
  0x34   : > { %p1586_p6 = pnand %p1585_p2, %p1579_p1 }
  0x36   : > { %1589 = shalt.err (!%p1586_p6)
}
  0x37   : > { %s2078_s7 = sld [smem:[#allocation17_spill]]  ;;  %s1837_s18 = sadd.s32 1, %s1690_s30  }
  0x38   : > { %s30_s22 = ssub.s32 %s1690_s30, %s1837_s18  ;;  %s33_s16 = sadd.s32 1, %s1686_s29 }
  0x39   : > { %p31_p12 = scmp.eq.s32.totalorder %s30_s22, 0  ;;  %p40_p0 = scmp.ne.s32.totalorder %s1686_s29, %s1682_s28 }
  0x3a   : > { %p41_p5 = scmp.eq.s32.totalorder %s1690_s30, 0  ;;  %p1437_p3 = scmp.lt.s32.totalorder %s1690_s30, 2 }
  0x3b   : > { %s1847_s23 = scalar_select %p31_p12, %s1686_s29, %s33_s16  }
  0x3c   : > { %p42_p10 = por %p41_p5, %p40_p0  ;;  %p2079_p7 = scmp.eq.s32.totalorder %s1778_s9, 1 }
  0x3d   : > { %1425 = dma.hbm_to_vmem [thread:$0]  (!%p1806_p11), %s2078_s7, 16, %s284_s20, [#allocation9]  }
  0x3e   : > { %p1851_p1 = por %p2079_p7, %p40_p0  ;;  %s294_s25 = sand.u32 1, %s1686_s29  }
  0x3f   : > { %s1262_s26 = sshll.u32 %s1690_s30, 7  ;;  %s1261_s20 = sshll.u32 %s294_s25, 3 }
  0x40   : > { %s2080_s24 = scalar_select %p1851_p1, 1, 0 }
  0x41   : > { %s1860_s15 = scalar_lea.hbm %s2056_s0, %s1262_s26  ;;  %s298_s17 = scalar_lea.vmem [#allocation2], %s1261_s20 }
  0x42   : > { %s305_s19 = sshll.u32 %s298_s17, 4  ;;  %p1862_p11 = pnand %p1437_p3, %p42_p10  ;;  %s306_s19 = int_to_ptr.vmem [resolvable:$true] %s305_s19 }
  0x43   : > { %s295_s22 = scalar_lea.sflag [#allocation3], %s294_s25  ;;  %s1590_s16 = scalar_lea.hbm %s1860_s15, 128 }
  0x44   : > { %p1591_p9 = scmp.ne.s32.totalorder %s1860_s15, %s1590_s16  ;;  %p1592_p13 = pneg %p1862_p11 }
  0x45   : > { %s1595_s14 = scalar_lea.hbm %s2056_s0, 256  ;;  %p1596_p12 = scmp.lt.s32.totalorder %s1860_s15, %s2056_s0 }
  0x46   : > { %p1593_p2 = pnand %p1592_p13, %p1591_p9  ;;  %p1597_p0 = scmp.lt.s32.totalorder %s1595_s14, %s1590_s16 }
  0x48   : > { %p1594_p6 = pneg %p1593_p2  ;;  %p1598_p5 = por %p1597_p0, %p1596_p12 }
  0x4a   : > { %p1599_p3 = pnand %p1598_p5, %p1594_p6 }
  0x4c   : > { %1602 = shalt.err (!%p1599_p3)
}
  0x4d   : > { %s1603_s17 = scalar_lea.vmem %s306_s19, 128  ;;  %s1697_s25 = smov [#allocation2]  }
  0x4e   : > { %p1604_p10 = scmp.ne.s32.totalorder %s306_s19, %s1603_s17  ;;  %s1608_s4 = sshll.u32 %s1697_s25, 4  ;;  %s1609_s4 = int_to_ptr.vmem [resolvable:$false] %s1608_s4 }
  0x4f   : > { %s1610_s7 = scalar_lea.vmem %s1609_s4, 256  ;;  %p1611_p9 = scmp.lt.s32.totalorder %s306_s19, %s1609_s4 }
  0x50   : > { %p1606_p7 = pnand %p1604_p10, %p1592_p13  ;;  %p1612_p2 = scmp.lt.s32.totalorder %s1610_s7, %s1603_s17 }
  0x52   : > { %p1607_p1 = pneg %p1606_p7  ;;  %p1613_p4 = por %p1612_p2, %p1611_p9 }
  0x54   : > { %p1614_p8 = pnand %p1613_p4, %p1607_p1 }
  0x56   : > { %1617 = shalt.err (!%p1614_p8)
}
  0x57   : > { %1429 = dma.hbm_to_vmem [thread:$0]  (!%p1862_p11), %s1860_s15, 128, %s306_s19, %s295_s22  }
  0x58   : > { %p2082_p6 = scmp.ne.s32.totalorder %s2074_s13, 0 }
  0x59   : > { %s1883_s2 = sand.u32 (!%p2082_p6), 1, %s1682_s28   ;;  %p2083_p4 = scmp.ne.s32.totalorder (!%p2082_p6), %s2072_s11, 0 }
  0x5a   : > { %320 = sbr.rel (%p2082_p6) target bundleno = 2433 (0x981), region = 52  ;;  %s1264_s16 = sshll.u32 (!%p2082_p6), %s1883_s2, 3 }
  0x5b   : > { %s323_s4 = scalar_lea.sflag (!%p2082_p6), [#allocation3], %s1883_s2  ;;  %s326_s7 = scalar_lea.vmem (!%p2082_p6), [#allocation2], %s1264_s16 }
  0x5f   : > { %1661 = dma.done.wait (%p2083_p4), %s323_s4, 128  }
  0x60   : > { %1663 = vsyncadd (%p2083_p4), %s323_s4, 4294967168  ;;  %p2084_p8 = scmp.eq.s32.totalorder %s1778_s9, 0 }
  0x62   : > { %1665 = dma.done.wait (%p2084_p8), [#allocation6], 512   ;;  %p2085_p1 = pmov %p2084_p8 }
  0x64   : > { %1667 = vsyncadd (%p2085_p1), [#allocation6], 4294966784  ;;  %p2086_p11 = pmov %p2085_p1 }
  0x65   : > { %p2087_p13 = pmov %p2085_p1 }
  0x66   : > { %1669 = dma.done.wait (%p2086_p11), [#allocation9], 16  }
  0x67   : > { %1671 = vsyncadd (%p2087_p13), [#allocation9], 4294967280  ;;  %v1698_v0 = vmov 0.0   ;;  %vm1699_vm0 = vmmov 0   ;;  %v1492_v1 = vld [vmem:[#allocation5 + $0x8] sm:$0xff]   ;;  %v1493_v2 = vld [vmem:[#allocation5] sm:$0xff]  }
  0x68   : > { %1320 = vmatprep.subr.bf16.mxu0 %v1698_v0  ;;  %1324 = vmatprep.mubr.msk.bf16.mxu0 %vm1699_vm0, %v1698_v0  ;;  %v1907_v3 = vld [vmem:[%s326_s7] sm:$0xff]  ;;  %vm403_vm1 = vcmask 261120   ;;  %s1700_s15 = smov 120   ;;  %s1701_s19 = smov 96   ;;  %vm458_vm2 = vcmask 64512   ;;  %vm520_vm3 = vcmask 1043456  }
  0x69   : > { %1328 = vmatprep.subr.bf16.mxu1 %v1698_v0  ;;  %1330 = vmatprep.mubr.msk.bf16.mxu1 %vm1699_vm0, %v1698_v0  ;;  %v379_v4 = vpack.c.bf16 %v1907_v3, %v1907_v3  ;;  %v1269_v5 = vld [vmem:[%s2059_s3] ss:$0 sm:$0xff]  ;;  %s1702_s21 = smov 88   ;;  %p374_p12 = scmp.lt.s32.totalorder %s1778_s9, 1  ;;  %v680_v48 = vld [vmem:[#allocation7 + $0x4] sm:$0xf] }
  0x6a   : > { %1321 = vmatpush3.bf16.msra.mxu0 %v1492_v1  ;;  %s1703_s20 = smov 56   ;;  %s1704_s17 = smov 64   ;;  %v567_v46 = vld [vmem:[#allocation7] sm:$0xf]  ;;  %v685_v49 = vsel %vm520_vm3, %v680_v48, 0 }
  0x6b   : > { %1322 = vmatprep.subr.bf16.mxu0 %v1698_v0  ;;  %s375_s22 = scalar_select %p374_p12, %s1778_s9, 1  ;;  %v731_v47 = vsel %vm520_vm3, %v567_v46, 0 }
  0x6c   : > { %s1705_s25 = smov 80   ;;  %s1706_s4 = smov 112  }
  0x6d   : > { %s376_s14 = scalar_lea.vmem %s2057_s1, %s375_s22  ;;  %s1707_s7 = smov 72  }
  0x6e   : > { %1323 = vmatpush3.bf16.msra.mxu0 %v1493_v2  ;;  %v1940_v17 = vld [vmem:[%s376_s14] ss:$0 sm:$0xff]  ;;  %s1708_s11 = smov 48   ;;  %s1709_s13 = smov 104  }
  0x6f   : > { %1334 = vmatprep.subr.bf16.mxu0 %v1698_v0  ;;  %s1290_s10 = sshll.u32 %s1778_s9, 7  ;;  %s373_s14 = scalar_lea.vmem [#allocation10], %s1264_s16 }
  0x70   : > { %p2088_p5 = scmp.ne.s32.totalorder %s2080_s24, 0 }
  0x71   : > { %1325 = vmatmul.mubr.msk.bf16.vlgmr.msra.gmra.mxu0 %vm403_vm1, %v379_v4 }
  0x72   : > { %1336 = vmatprep.mubr.msk.bf16.mxu0 %vm1699_vm0, %v1698_v0 }
 0x131   : > { %v441_v6 = vpop.f32.mrf.mxu0 }
 0x132   : > { %v442_v7 = vadd.f32 %v1269_v5, %v441_v6 }
 0x133   : > { %v1326_v8 = vpop.f32.mrf.mxu0 }
 0x134   : > { %v1919_v9 = vpack.c.bf16 %v442_v7, %v442_v7 }
 0x135   : > { %v444_v10 = vpop.f32.mrf.mxu0 }
 0x136   : > { %568 = vrot.lane.b32.xlu1 %v1919_v9, %s1700_s15  ;;  %456 = vrot.lane.b32.xlu0 %v1919_v9, %s1701_s19  ;;  %s1710_s15 = smov 40  }
 0x137   : > { %v1327_v11 = vpop.f32.mrf.mxu0 }
 0x13a   : > { %570 = vrot.lane.b32.xlu0 %v1919_v9, %s1702_s21 }
 0x1a8   : > { %v457_v12 = vpop.permute.xlu0 %456  ;;  %v569_v16 = vpop.permute.xlu1 %568 }
 0x1a9   : > { %v463_v13 = vsel %vm458_vm2, %v457_v12, 0 }
 0x1aa   : > { %1329 = vmatpush3.bf16.xpose.msra.mxu1 %v463_v13 }
 0x1ab   : > { %1340 = vmatprep.subr.bf16.mxu1 %v1698_v0 }
 0x1ac   : > { %v571_v14 = vpop.permute.xlu0 %570 }
 0x1ad   : > { %v576_v15 = vsel %vm458_vm2, %v571_v14, 0 }
 0x1b1   : > { %1331 = vmatmul.mubr.msk.bf16.vlgmr.msra.gmra.mxu1 %vm458_vm2, %v1919_v9 }
 0x1b2   : > { %1341 = vmatpush3.bf16.xpose.msra.mxu1 %v576_v15  ;;  %1342 = vmatprep.mubr.msk.bf16.mxu1 %vm1699_vm0, %v1698_v0 }
 0x1b3   : > { %1352 = vmatprep.subr.bf16.mxu1 %v1698_v0 }
 0x1b9   : > { %1343 = vmatmul.mubr.msk.bf16.vlgmr.msra.gmra.mxu1 %vm458_vm2, %v569_v16 }
 0x1ba   : > { %1354 = vmatprep.mubr.msk.bf16.mxu1 %vm1699_vm0, %v1698_v0  ;;  %1353 = vmatpush3.bf16.msra.mxu1 %v685_v49 }
 0x1bb   : > { %1364 = vmatprep.subr.bf16.mxu1 %v1698_v0 }
 0x271   : > { %v499_v18 = vpop.f32.mrf.mxu1 }
 0x272   : > { %v500_v19 = vadd.f32 %v1940_v17, %v499_v18 }
 0x273   : > { %v1332_v20 = vpop.f32.mrf.mxu1 }
 0x274   : > { %v505_v21 = vsel %vm458_vm2, %v500_v19, -inf }
 0x275   : > { %506 = vmax.xlane.f32.xlu1 %v505_v21  ;;  %v502_v22 = vpop.f32.mrf.mxu1 }
 0x277   : > { %v1333_v23 = vpop.f32.mrf.mxu1 }
 0x279   : > { %v612_v24 = vpop.f32.mrf.mxu1 }
 0x27a   : > { %v613_v25 = vadd.f32 %v1940_v17, %v612_v24 }
 0x27b   : > { %v1344_v26 = vpop.f32.mrf.mxu1 }
 0x27c   : > { %v618_v27 = vsel %vm458_vm2, %v613_v25, -inf }
 0x27d   : > { %619 = vmax.xlane.f32.xlu0 %v618_v27  ;;  %v615_v28 = vpop.f32.mrf.mxu1 }
 0x27f   : > { %v1345_v29 = vpop.f32.mrf.mxu1 }
 0x286   : > { %628 = vrot.lane.b32.xlu1 %v1919_v9, %s1703_s20  ;;  %s1147_s20 = sshll.u32 %s373_s14, 4  ;;  %s1148_s20 = int_to_ptr.vmem [resolvable:$true] %s1147_s20 }
 0x293   : > { %515 = vrot.lane.b32.xlu0 %v1919_v9, %s1704_s17 }
 0x297   : > { %775 = vrot.lane.b32.xlu0 %v1919_v9, %s1705_s25 }
 0x29b   : > { %773 = vrot.lane.b32.xlu0 %v1919_v9, %s1706_s4  ;;  %s1145_s4 = scalar_lea.hbm %s2064_s8, %s1290_s10 }
 0x2fe   : > { %v507_v30 = vpop.xlane.xlu1 %506 }
 0x2ff   : > { %v508_v31 = vsub.f32 %v500_v19, %v507_v30 }
 0x301   : > { %v509_v32 = vmul.f32 1.442695, %v508_v31 }
 0x302   : > { %v629_v39 = vpop.permute.xlu1 %628 }
 0x303   : > { %1494 = vpow2.f32 %v509_v32  ;;  %v634_v42 = vsel %vm520_vm3, %v629_v39, 0 }
 0x306   : > { %v620_v33 = vpop.xlane.xlu0 %619 }
 0x307   : > { %v621_v34 = vsub.f32 %v613_v25, %v620_v33 }
 0x309   : > { %v622_v35 = vmul.f32 1.442695, %v621_v34 }
 0x30a   : > { %v516_v36 = vpop.permute.xlu0 %515 }
 0x30b   : > { %1496 = vpow2.f32 %v622_v35  ;;  %v522_v37 = vsel %vm520_vm3, %v516_v36, 0  ;;  %v885_v35 = vld [vmem:[#allocation7 + $0x8] sm:$0xf] }
 0x30c   : > { %1335 = vmatpush3.bf16.msra.mxu0 %v522_v37  ;;  %v890_v36 = vsel %vm520_vm3, %v885_v35, 0 }
 0x30d   : > { %1346 = vmatprep.subr.bf16.mxu0 %v1698_v0 }
 0x30e   : > { %v776_v50 = vpop.permute.xlu0 %775 }
 0x30f   : > { %v781_v5 = vsel %vm458_vm2, %v776_v50, 0 }
 0x310   : > { %v1495_v38 = vpop.eup %1494 }
 0x311   : > { %v511_v40 = vsel %vm458_vm2, %v1495_v38, 0.0  ;;  %v514_v41 = vpack.c.bf16 %v1495_v38, %v1495_v38 }
 0x312   : > { %512 = vadd.xlane.f32.xlu0 %v511_v40  ;;  %v774_v51 = vpop.permute.xlu0 %773 }
 0x313   : > { %1337 = vmatmul.mubr.msk.bf16.vlgmr.msra.gmra.mxu0 %vm458_vm2, %v514_v41 }
 0x314   : > { %1347 = vmatpush3.bf16.msra.mxu0 %v634_v42  ;;  %1348 = vmatprep.mubr.msk.bf16.mxu0 %vm1699_vm0, %v1698_v0 }
 0x315   : > { %1358 = vmatprep.subr.bf16.mxu0 %v1698_v0 }
 0x318   : > { %v1497_v43 = vpop.eup %1496 }
 0x319   : > { %v624_v44 = vsel %vm458_vm2, %v1497_v43, 0.0  ;;  %v627_v45 = vpack.c.bf16 %v1497_v43, %v1497_v43 }
 0x31a   : > { %625 = vadd.xlane.f32.xlu1 %v624_v44 }
 0x31b   : > { %1349 = vmatmul.mubr.msk.bf16.vlgmr.msra.gmra.mxu0 %vm458_vm2, %v627_v45 }
 0x31c   : > { %1360 = vmatprep.mubr.msk.bf16.mxu0 %vm1699_vm0, %v1698_v0  ;;  %1359 = vmatpush3.bf16.msra.mxu0 %v731_v47 }
 0x31d   : > { %1370 = vmatprep.subr.bf16.mxu0 %v1698_v0 }
 0x328   : > { %935 = vrot.lane.b32.xlu0 %v1919_v9, %s1707_s7  ;;  %s1134_s7 = scalar_lea.sflag [#allocation4], %s1883_s2 }
 0x39b   : > { %v513_v52 = vpop.xlane.xlu0 %512 }
 0x39c   : > { %1498 = vrcp.f32 %v513_v52 }
 0x39f   : > { %v936_v30 = vpop.permute.xlu0 %935 }
 0x3a0   : > { %v941_v33 = vsel %vm458_vm2, %v936_v30, 0  ;;  %v1288_v30 = vld [vmem:[#allocation8] ss:$0 sm:$0xff] }
 0x3a3   : > { %v626_v53 = vpop.xlane.xlu1 %625 }
 0x3a4   : > { %1500 = vrcp.f32 %v626_v53 }
 0x3a9   : > { %v1499_v54 = vpop.eup %1498 }
 0x3b1   : > { %v1501_v61 = vpop.eup %1500 }
 0x3d3   : > { %v558_v55 = vpop.f32.mrf.mxu0 }
 0x3d4   : > { %v565_v56 = vmul.f32 %v1499_v54, %v558_v55 }
 0x3d5   : > { %v1338_v57 = vpop.f32.mrf.mxu0 }
 0x3d6   : > { %v566_v58 = vpack.c.bf16 %v565_v56, %v565_v56  ;;  %v1045_v57 = vld [vmem:[#allocation7 + $0xc] sm:$0xf] }
 0x3d7   : > { %v561_v59 = vpop.f32.mrf.mxu0 }
 0x3d8   : > { %1361 = vmatmul.mubr.msk.bf16.vlgmr.msra.gmra.mxu0 %vm458_vm2, %v566_v58  ;;  %v1050_v58 = vsel %vm520_vm3, %v1045_v57, 0 }
 0x3d9   : > { %v1339_v60 = vpop.f32.mrf.mxu0  ;;  %1372 = vmatprep.mubr.msk.bf16.mxu0 %vm1699_vm0, %v1698_v0 }
 0x3db   : > { %v670_v62 = vpop.f32.mrf.mxu0 }
 0x3dc   : > { %v677_v63 = vmul.f32 %v1501_v61, %v670_v62 }
 0x3dd   : > { %v1350_v1 = vpop.f32.mrf.mxu0 }
 0x3de   : > { %v678_v2 = vpack.c.bf16 %v677_v63, %v677_v63 }
 0x3df   : > { %v673_v4 = vpop.f32.mrf.mxu0 }
 0x3e0   : > { %1355 = vmatmul.mubr.msk.bf16.vlgmr.msra.gmra.mxu1 %vm458_vm2, %v678_v2 }
 0x3e1   : > { %1365 = vmatpush3.bf16.xpose.msra.mxu1 %v781_v5  ;;  %v1351_v6 = vpop.f32.mrf.mxu0  ;;  %1366 = vmatprep.mubr.msk.bf16.mxu1 %vm1699_vm0, %v1698_v0 }
 0x3e2   : > { %1376 = vmatprep.subr.bf16.mxu1 %v1698_v0 }
 0x3e8   : > { %1367 = vmatmul.mubr.msk.bf16.vlgmr.msra.gmra.mxu1 %vm458_vm2, %v774_v51 }
 0x3e9   : > { %1378 = vmatprep.mubr.msk.bf16.mxu1 %vm1699_vm0, %v1698_v0  ;;  %1377 = vmatpush3.bf16.msra.mxu1 %v890_v36 }
 0x3ea   : > { %1388 = vmatprep.subr.bf16.mxu1 %v1698_v0 }
 0x498   : > { %v767_v7 = vpop.f32.mrf.mxu0 }
 0x49a   : > { %v1362_v8 = vpop.f32.mrf.mxu0 }
 0x49c   : > { %v770_v10 = vpop.f32.mrf.mxu0 }
 0x49e   : > { %v1363_v11 = vpop.f32.mrf.mxu0 }
 0x49f   : > { %v1286_v11 = vld [vmem:[%s2061_s5] ss:$0 sm:$0xff] }
 0x4a0   : > { %v721_v12 = vpop.f32.mrf.mxu1 }
 0x4a1   : > { %v1978_v13 = vadd.f32 %v767_v7, %v721_v12 }
 0x4a2   : > { %v1356_v14 = vpop.f32.mrf.mxu1 }
 0x4a4   : > { %v724_v15 = vpop.f32.mrf.mxu1 }
 0x4a6   : > { %v1357_v16 = vpop.f32.mrf.mxu1 }
 0x4a8   : > { %v817_v18 = vpop.f32.mrf.mxu1 }
 0x4a9   : > { %v818_v19 = vadd.f32 %v1940_v17, %v817_v18 }
 0x4aa   : > { %v1368_v20 = vpop.f32.mrf.mxu1 }
 0x4ab   : > { %v823_v21 = vsel %vm458_vm2, %v818_v19, -inf }
 0x4ac   : > { %824 = vmax.xlane.f32.xlu1 %v823_v21  ;;  %v820_v22 = vpop.f32.mrf.mxu1 }
 0x4ae   : > { %v1369_v23 = vpop.f32.mrf.mxu1 }
 0x4bd   : > { %833 = vrot.lane.b32.xlu1 %v1919_v9, %s1708_s11  ;;  %s1618_s11 = scalar_lea.vmem %s1148_s20, 128 }
 0x4be   : > { %p1619_p0 = scmp.ne.s32.totalorder %s1148_s20, %s1618_s11 }
 0x4c0   : > { %p1620_p3 = pnand %p1619_p0, %p2088_p5 }
 0x4c1   : > { %933 = vrot.lane.b32.xlu1 %v1919_v9, %s1709_s13  ;;  %s1711_s13 = smov [#allocation10]  }
 0x4c2   : > { %p1621_p10 = pneg %p1620_p3  ;;  %s1622_s9 = sshll.u32 %s1711_s13, 4  ;;  %s1623_s9 = int_to_ptr.vmem [resolvable:$false] %s1622_s9 }
 0x4c3   : > { %s1624_s16 = scalar_lea.vmem %s1623_s9, 256  ;;  %p1625_p7 = scmp.lt.s32.totalorder %s1148_s20, %s1623_s9 }
 0x4c4   : > { %p1626_p9 = scmp.lt.s32.totalorder %s1624_s16, %s1618_s11 }
 0x4c6   : > { %p1627_p2 = por %p1626_p9, %p1625_p7 }
 0x4c8   : > { %p1628_p6 = pnand %p1627_p2, %p1621_p10 }
 0x535   : > { %v825_v24 = vpop.xlane.xlu1 %824 }
 0x536   : > { %v826_v25 = vsub.f32 %v818_v19, %v825_v24 }
 0x538   : > { %v827_v26 = vmul.f32 1.442695, %v826_v25 }
 0x539   : > { %v834_v27 = vpop.permute.xlu1 %833 }
 0x53a   : > { %1502 = vpow2.f32 %v827_v26  ;;  %v839_v28 = vsel %vm520_vm3, %v834_v27, 0 }
 0x53b   : > { %1371 = vmatpush3.bf16.msra.mxu0 %v839_v28  ;;  %v1287_v28 = vld [vmem:[%s2062_s6] ss:$0 sm:$0xff] }
 0x53c   : > { %1382 = vmatprep.subr.bf16.mxu0 %v1698_v0 }
 0x53d   : > { %v934_v34 = vpop.permute.xlu1 %933 }
 0x547   : > { %v1503_v29 = vpop.eup %1502 }
 0x548   : > { %v829_v31 = vsel %vm458_vm2, %v1503_v29, 0.0  ;;  %v832_v32 = vpack.c.bf16 %v1503_v29, %v1503_v29 }
 0x549   : > { %830 = vadd.xlane.f32.xlu1 %v829_v31 }
 0x54a   : > { %1373 = vmatmul.mubr.msk.bf16.vlgmr.msra.gmra.mxu0 %vm458_vm2, %v832_v32 }
 0x54b   : > { %1383 = vmatpush3.bf16.xpose.msra.mxu0 %v941_v33  ;;  %1384 = vmatprep.mubr.msk.bf16.mxu0 %vm1699_vm0, %v1698_v0 }
 0x54c   : > { %1394 = vmatprep.subr.bf16.mxu0 %v1698_v0 }
 0x552   : > { %1385 = vmatmul.mubr.msk.bf16.vlgmr.msra.gmra.mxu0 %vm458_vm2, %v934_v34 }
 0x553   : > { %1396 = vmatprep.mubr.msk.bf16.mxu0 %vm1699_vm0, %v1698_v0  ;;  %1395 = vmatpush3.bf16.msra.mxu0 %v1050_v58 }
 0x5d2   : > { %v831_v37 = vpop.xlane.xlu1 %830 }
 0x5d3   : > { %1504 = vrcp.f32 %v831_v37 }
 0x5e0   : > { %v1505_v38 = vpop.eup %1504 }
 0x60a   : > { %v875_v39 = vpop.f32.mrf.mxu0 }
 0x60b   : > { %v882_v40 = vmul.f32 %v1505_v38, %v875_v39 }
 0x60c   : > { %v1374_v41 = vpop.f32.mrf.mxu0 }
 0x60d   : > { %v883_v42 = vpack.c.bf16 %v882_v40, %v882_v40 }
 0x60e   : > { %v878_v43 = vpop.f32.mrf.mxu0 }
 0x60f   : > { %1379 = vmatmul.mubr.msk.bf16.vlgmr.msra.gmra.mxu1 %vm458_vm2, %v883_v42 }
 0x610   : > { %v1375_v44 = vpop.f32.mrf.mxu0  ;;  %1390 = vmatprep.mubr.msk.bf16.mxu1 %vm1699_vm0, %v1698_v0 }
 0x612   : > { %v977_v45 = vpop.f32.mrf.mxu0 }
 0x613   : > { %v978_v46 = vadd.f32 %v1940_v17, %v977_v45 }
 0x614   : > { %v1386_v47 = vpop.f32.mrf.mxu0 }
 0x615   : > { %v983_v48 = vsel %vm458_vm2, %v978_v46, -inf }
 0x616   : > { %984 = vmax.xlane.f32.xlu0 %v983_v48  ;;  %v980_v49 = vpop.f32.mrf.mxu0 }
 0x618   : > { %v1387_v50 = vpop.f32.mrf.mxu0 }
 0x62c   : > { %993 = vrot.lane.b32.xlu0 %v1919_v9, %s1710_s15 }
 0x69f   : > { %v985_v51 = vpop.xlane.xlu0 %984 }
 0x6a0   : > { %v986_v52 = vsub.f32 %v978_v46, %v985_v51 }
 0x6a2   : > { %v987_v53 = vmul.f32 1.442695, %v986_v52 }
 0x6a3   : > { %v994_v54 = vpop.permute.xlu0 %993 }
 0x6a4   : > { %1506 = vpow2.f32 %v987_v53  ;;  %v999_v55 = vsel %vm520_vm3, %v994_v54, 0 }
 0x6a5   : > { %1389 = vmatpush3.bf16.msra.mxu1 %v999_v55 }
 0x6b1   : > { %v1507_v0 = vpop.eup %1506 }
 0x6b2   : > { %v989_v17 = vsel %vm458_vm2, %v1507_v0, 0.0  ;;  %v992_v56 = vpack.c.bf16 %v1507_v0, %v1507_v0 }
 0x6b3   : > { %990 = vadd.xlane.f32.xlu1 %v989_v17 }
 0x6b4   : > { %1391 = vmatmul.mubr.msk.bf16.vlgmr.msra.gmra.mxu1 %vm458_vm2, %v992_v56 }
 0x6cf   : > { %v926_v9 = vpop.f32.mrf.mxu1 }
 0x6d0   : > { %v932_v59 = vadd.f32 %v926_v9, %v1978_v13 }
 0x6d1   : > { %v1380_v60 = vpop.f32.mrf.mxu1 }
 0x6d3   : > { %v929_v61 = vpop.f32.mrf.mxu1 }
 0x6d5   : > { %v1381_v62 = vpop.f32.mrf.mxu1 }
 0x73c   : > { %v991_v63 = vpop.xlane.xlu1 %990 }
 0x73d   : > { %1508 = vrcp.f32 %v991_v63 }
 0x74a   : > { %v1509_v1 = vpop.eup %1508 }
 0x774   : > { %v1035_v2 = vpop.f32.mrf.mxu1 }
 0x775   : > { %v1042_v4 = vmul.f32 %v1509_v1, %v1035_v2 }
 0x776   : > { %v1392_v5 = vpop.f32.mrf.mxu1 }
 0x777   : > { %v1043_v6 = vpack.c.bf16 %v1042_v4, %v1042_v4 }
 0x778   : > { %v1038_v7 = vpop.f32.mrf.mxu1 }
 0x779   : > { %1397 = vmatmul.mubr.msk.bf16.vlgmr.msra.gmra.mxu0 %vm458_vm2, %v1043_v6 }
 0x77a   : > { %v1393_v8 = vpop.f32.mrf.mxu1 }
 0x839   : > { %v1086_v10 = vpop.f32.mrf.mxu0 }
 0x83a   : > { %v1092_v12 = vadd.f32 %v1086_v10, %v932_v59 }
 0x83b   : > { %v1398_v13 = vpop.f32.mrf.mxu0 }
 0x83c   : > { %v1100_v14 = vadd.f32 %v1286_v11, %v1092_v12 }
 0x83d   : > { %v1089_v15 = vpop.f32.mrf.mxu0 }
 0x83e   : > { %v1101_v16 = vadd.f32 %v1100_v14, %v1907_v3 }
 0x83f   : > { %v1399_v18 = vpop.f32.mrf.mxu0 }
 0x840   : > { %v1102_v19 = vsel %vm403_vm1, %v1101_v16, 0.0 }
 0x841   : > { %1103 = vadd.xlane.f32.xlu1 %v1102_v19 }
 0x8ca   : > { %v1104_v20 = vpop.xlane.xlu1 %1103 }
 0x8cb   : > { %v1106_v21 = vmul.f32 0.03125, %v1104_v20 }
 0x8cd   : > { %v1107_v22 = vsub.f32 %v1101_v16, %v1106_v21 }
 0x8cf   : > { %v1108_v23 = vmul.f32 %v1107_v22, %v1107_v22 }
 0x8d1   : > { %v1109_v24 = vsel %vm403_vm1, %v1108_v23, 0.0 }
 0x8d2   : > { %1110 = vadd.xlane.f32.xlu1 %v1109_v24 }
 0x95b   : > { %v1111_v25 = vpop.xlane.xlu1 %1110 }
 0x95c   : > { %v1112_v26 = vmul.f32 0.03125, %v1111_v25 }
 0x95e   : > { %v1113_v27 = vadd.f32 1e-05, %v1112_v26 }
 0x960   : > { %1510 = vrsqrt.f32 %v1113_v27 }
 0x96d   : > { %v1511_v3 = vpop.eup %1510 }
 0x96e   : > { %v1115_v29 = vmul.f32 %v1511_v3, %v1107_v22 }
 0x970   : > { %v1123_v31 = vmul.f32 %v1287_v28, %v1115_v29 }
 0x972   : > { %v1131_v32 = vadd.f32 %v1288_v30, %v1123_v31 }
 0x974   : > { %1132 = vst.msk [vmem:[%s373_s14] sm:$0xff] %vm403_vm1, %v1131_v32 }
 0x975   : > { %1631 = shalt.err (!%p1628_p6)
}
 0x976   : > { %s1632_s15 = scalar_lea.hbm %s1145_s4, 128  ;;  %s1636_s21 = scalar_lea.hbm %s2064_s8, 256 }
 0x977   : > { %p1633_p4 = scmp.ne.s32.totalorder %s1145_s4, %s1632_s15  ;;  %p1637_p11 = scmp.lt.s32.totalorder %s1145_s4, %s2064_s8 }
 0x978   : > { %p1638_p13 = scmp.lt.s32.totalorder %s1636_s21, %s1632_s15 }
 0x979   : > { %p1634_p8 = pnand %p1633_p4, %p2088_p5 }
 0x97a   : > { %p1639_p12 = por %p1638_p13, %p1637_p11 }
 0x97b   : > { %p1635_p1 = pneg %p1634_p8 }
 0x97d   : > { %p1640_p0 = pnand %p1639_p12, %p1635_p1 }
 0x97f   : > { %1643 = shalt.err (!%p1640_p0)
}
 0x980   : > { %1414 = dma.vmem_to_hbm [thread:$0]  (%p2088_p5), %s1148_s20, 128, %s1145_s4, %s1134_s7  }
 0x981 PF: > { %s1159_s10 = sand.u32 1, %s1678_s27   ;;  %p2089_p3 = scmp.ne.s32.totalorder %s2073_s12, 0 }
 0x982   : > { %p2090_p10 = scmp.ge.s32.totalorder %s1690_s30, 2  ;;  %s1160_s14 = scalar_lea.sflag [#allocation4], %s1159_s10 }
 0x984   : > { %p1431_p7 = pnand %p2090_p10, %p2089_p3 }
 0x986   : > { %p1432_p9 = pneg %p1431_p7 }
 0x988   : > { %1673 = dma.done.wait (%p1432_p9), %s1160_s14, 128  }
 0x989   : > { %1675 = vsyncadd (%p1432_p9), %s1160_s14, 4294967168  ;;  %p23_p2 = scmp.ge.s32.totalorder %s1837_s18, 4   ;;  %s2091_s27 = smov %s1682_s28 }
 0x98a   : > { %s2092_s28 = smov %s1686_s29  ;;  %s2093_s29 = smov %s1847_s23 }
 0x98b   : > { %s2094_s30 = smov %s1837_s18  ;;  %25 = sbr.rel (!%p23_p2) target bundleno = 11 (0xb), region = 115 }
 0x990   :  { %1165 = vsyncpa [#allocation3], 1 }
 0x991   :  { %1167 = vsyncpa [#allocation3 + $0x1], 1 }
 0x992   :  { %1168 = vsyncpa [#allocation6], 1 }
 0x993   :  { %1169 = vsyncpa [#allocation9], 1 }
 0x994   :  { %1170 = vsyncpa [#allocation4], 1 }
 0x995   :  { %1172 = vsyncpa [#allocation4 + $0x1], 1 }

</bundles_post_ra>
